<compile_context>
chip_gen: v7x
topology: tpu7x:2x2x1
jax: 0.10.0
libtpu: 0.0.40
codegen_flags: <defaults>
</compile_context>

<pallas_src>
import math
from functools import partial

import jax
import jax.numpy as jnp
from jax import lax
from jax.experimental import pallas as pl
from jax.experimental.pallas import tpu as pltpu

# ---- model config (small, synthetic) ----------------------------------------
BATCH = 2
SEQ = 8
HIDDEN = 32
NUM_HEADS = 2
HEAD_DIM = HIDDEN // NUM_HEADS
FFN = 64
NUM_LAYERS = 2
VOCAB = 64
LN_EPS = 1e-12

# row layout of the packed (L, 6, H) per-layer vector params
_BO, _B2, _LN1G, _LN1B, _LN2G, _LN2B = range(6)


# ---- Pallas kernel: whole encoder stack + CLS pooling, single invocation ----
def _encoder_stack_kernel(num_heads, num_layers, batch, seq,
                          x_ref, mb_ref,
                          wqkv_ref, bqkv_ref, wo_ref,
                          w1_ref, b1_ref, w2_ref, hv_ref,
                          cls_ref,
                          act_ref):
    BS, H = act_ref.shape
    hd = H // num_heads
    scale = 1.0 / math.sqrt(hd)

    act_ref[...] = x_ref[...]          # seed the carried activation (f32)
    mb_all = mb_ref[...]               # (B, S) additive mask bias; hoisted (layer-invariant)

    def layernorm(z, g, b):
        mu = jnp.mean(z, axis=-1, keepdims=True)
        var = jnp.mean((z - mu) ** 2, axis=-1, keepdims=True)
        return (z - mu) * lax.rsqrt(var + LN_EPS) * g + b

    def layer_body(l, carry):
        x = act_ref[...]               # (B*S, H) f32, VMEM-resident across layers
        hv = hv_ref[l]                 # (6, H): bo, b2, ln1g, ln1b, ln2g, ln2b

        # fused QKV projection on the batch-folded activation:
        # one (B*S, H) @ (H, 3H) MXU matmul, bf16 in / f32 accum.
        qkv = jnp.dot(x.astype(jnp.bfloat16), wqkv_ref[l],
                      preferred_element_type=jnp.float32) + bqkv_ref[l]

        wo = wo_ref[l]                 # (H, H) bf16

        # attention: per-batch, per-head plain 2-D matmuls (batch/head counts
        # are tiny statics); head outputs are accumulated through Wo row-blocks
        # instead of lane-concatenated.
        attn_rows = []
        for b in range(batch):
            r0 = b * seq
            mb = mb_all[b:b + 1, :]                                # (1, S)
            attn_b = jnp.zeros((seq, H), jnp.float32)
            for h in range(num_heads):
                qs = qkv[r0:r0 + seq, h * hd:(h + 1) * hd]
                ks = qkv[r0:r0 + seq, H + h * hd:H + (h + 1) * hd]
                vs = qkv[r0:r0 + seq, 2 * H + h * hd:2 * H + (h + 1) * hd]
                # QK^T: contraction over the feature dim of both operands, so
                # the MXU handles the K "transpose" (no explicit XLU transpose).
                s = lax.dot_general(qs, ks, (((1,), (1,)), ((), ())),
                                    preferred_element_type=jnp.float32) * scale
                s = s + mb                                         # mask key positions
                s = s - jnp.max(s, axis=-1, keepdims=True)
                p = jnp.exp(s)
                p = p * pl.reciprocal(jnp.sum(p, axis=-1, keepdims=True),
                                      approx=True)
                ctx_h = jnp.dot(p, vs, preferred_element_type=jnp.float32)
                attn_b = attn_b + jnp.dot(ctx_h.astype(jnp.bfloat16),
                                          wo[h * hd:(h + 1) * hd, :],
                                          preferred_element_type=jnp.float32)
            attn_rows.append(attn_b)
        # row-axis (sublane) concat of per-batch blocks; S=8 keeps it vreg-aligned
        attn = jnp.concatenate(attn_rows, axis=0) + hv[_BO:_BO + 1, :]

        h1 = layernorm(x + attn, hv[_LN1G:_LN1G + 1, :], hv[_LN1B:_LN1B + 1, :])

        # FFN: two wide (B*S, .) MXU matmuls (bf16 in / f32 accum), GELU in f32.
        ff = jnp.dot(h1.astype(jnp.bfloat16), w1_ref[l],
                     preferred_element_type=jnp.float32) + b1_ref[l]
        # GELU (tanh approximation, HF 'gelu_new'); exact erf differs slightly.
        ff = 0.5 * ff * (1.0 + jnp.tanh(0.7978845608028654 *
                                        (ff + 0.044715 * (ff * ff * ff))))
        ff = jnp.dot(ff.astype(jnp.bfloat16), w2_ref[l],
                     preferred_element_type=jnp.float32) + hv[_B2:_B2 + 1, :]

        act_ref[...] = layernorm(h1 + ff, hv[_LN2G:_LN2G + 1, :],
                                 hv[_LN2B:_LN2B + 1, :])
        return carry

    lax.fori_loop(0, num_layers, layer_body, 0, unroll=True)

    # CLS pooling inside the kernel: emit only row 0 of each sequence, so HBM
    # writeback is (B, H) instead of the full (B, S, H) hidden state.
    final = act_ref[...]
    for b in range(batch):
        cls_ref[b:b + 1, :] = final[b * seq:b * seq + 1, :]


def encoder_stack_cls(x, mask_bias, p):
    """All NUM_LAYERS encoder layers + CLS pooling in one Pallas call.

    x: (B, S, H) f32 embeddings; mask_bias: (B, S) f32 additive bias.
    Returns (B, H) f32 CLS hidden states.
    """
    B, S, H = x.shape
    x2d = x.reshape(B * S, H)          # fold batch into the row (sublane) axis
    return pl.pallas_call(
        partial(_encoder_stack_kernel, NUM_HEADS, NUM_LAYERS, B, S),
        out_shape=jax.ShapeDtypeStruct((B, H), jnp.float32),
        # No grid: single invocation; all operands are whole-array VMEM-resident
        # (total stacked weights ~32 KiB bf16), so there is no per-step weight
        # DMA traffic or pipeline-step overhead.
        in_specs=[pl.BlockSpec(memory_space=pltpu.MemorySpace.VMEM)] * 9,
        out_specs=pl.BlockSpec(memory_space=pltpu.MemorySpace.VMEM),
        scratch_shapes=[pltpu.VMEM((B * S, H), jnp.float32)],
        compiler_params=pltpu.CompilerParams(vmem_limit_bytes=64 << 20),
    )(x2d, mask_bias, p['wqkv'], p['bqkv'], p['wo'], p['w1'], p['b1'],
      p['w2'], p['hvecs'])


# ---- parameter construction (deterministic, in-script, pre-stacked) ---------
def init_params(key):
    def nrm(k, shape, scale=0.02):
        return (scale * jax.random.normal(k, shape)).astype(jnp.float32)

    keys = jax.random.split(key, 6)
    hrow = jnp.stack([jnp.zeros((HIDDEN,)),   # bo
                      jnp.zeros((HIDDEN,)),   # b2
                      jnp.ones((HIDDEN,)),    # ln1 gamma
                      jnp.zeros((HIDDEN,)),   # ln1 beta
                      jnp.ones((HIDDEN,)),    # ln2 gamma
                      jnp.zeros((HIDDEN,))    # ln2 beta
                      ]).astype(jnp.float32)  # (6, H)
    return {
        'tok_emb': nrm(keys[0], (VOCAB, HIDDEN)),
        'pos_emb': nrm(keys[1], (SEQ, HIDDEN)),
        'emb_ln_g': jnp.ones((HIDDEN,), jnp.float32),
        'emb_ln_b': jnp.zeros((HIDDEN,), jnp.float32),
        # stacked per-layer encoder weights (leading axis = layer)
        'wqkv': nrm(keys[2], (NUM_LAYERS, HIDDEN, 3 * HIDDEN)).astype(jnp.bfloat16),
        'bqkv': jnp.zeros((NUM_LAYERS, 1, 3 * HIDDEN), jnp.float32),
        'wo':   nrm(keys[3], (NUM_LAYERS, HIDDEN, HIDDEN)).astype(jnp.bfloat16),
        'w1':   nrm(keys[4], (NUM_LAYERS, HIDDEN, FFN)).astype(jnp.bfloat16),
        'b1':   jnp.zeros((NUM_LAYERS, 1, FFN), jnp.float32),
        'w2':   nrm(keys[5], (NUM_LAYERS, FFN, HIDDEN)).astype(jnp.bfloat16),
        'hvecs': jnp.tile(hrow[None], (NUM_LAYERS, 1, 1)),   # (L, 6, H)
    }


# ---- full forward: SimCSEModel(encoder).forward(input_ids, attention_mask) --
def simcse_forward(params, input_ids, attention_mask):
    # TODO(synk): token-embedding gather + embedding LayerNorm stay in plain
    # JAX (data-dependent gather; not worth a Pallas DMA-gather at this size).
    B, S = input_ids.shape
    x = params['tok_emb'][input_ids] + params['pos_emb'][None, :S]
    mu = x.mean(-1, keepdims=True)
    var = ((x - mu) ** 2).mean(-1, keepdims=True)
    x = (x - mu) / jnp.sqrt(var + LN_EPS) * params['emb_ln_g'] + params['emb_ln_b']
    x = x.astype(jnp.float32)

    # attention_mask (B,S) with 1=keep, 0=pad  ->  additive bias (B, S)
    mask_bias = (1.0 - attention_mask.astype(jnp.float32)) * -1e9

    # SimCSEModel.forward: outputs.last_hidden_state[:, 0] (CLS pooling),
    # computed entirely inside the fused encoder kernel.
    return encoder_stack_cls(x, mask_bias, params)


if __name__ == "__main__":
    key = jax.random.PRNGKey(0)
    pkey, ikey = jax.random.split(key)
    params = init_params(pkey)

    input_ids = jax.random.randint(ikey, (BATCH, SEQ), 0, VOCAB, dtype=jnp.int32)
    attention_mask = jnp.array(
        [[1, 1, 1, 1, 1, 1, 1, 1],
         [1, 1, 1, 1, 1, 0, 0, 0]], dtype=jnp.int32)   # second example padded

    cls = simcse_forward(params, input_ids, attention_mask)
    cls = jax.block_until_ready(cls)
    assert cls.shape == (BATCH, HIDDEN) and cls.dtype == jnp.float32
    assert bool(jnp.all(jnp.isfinite(cls)))
    print("KERNEL_OK")
</pallas_src>

<mosaic_0001>
module attributes {stable_mosaic.version = 11 : i64} {
  func.func @_encoder_stack_kernel(%arg0: memref<16x32xf32, #tpu.memory_space<vmem>>, %arg1: memref<2x8xf32, #tpu.memory_space<vmem>>, %arg2: memref<2x32x96xbf16, #tpu.memory_space<vmem>>, %arg3: memref<2x1x96xf32, #tpu.memory_space<vmem>>, %arg4: memref<2x32x32xbf16, #tpu.memory_space<vmem>>, %arg5: memref<2x32x64xbf16, #tpu.memory_space<vmem>>, %arg6: memref<2x1x64xf32, #tpu.memory_space<vmem>>, %arg7: memref<2x64x32xbf16, #tpu.memory_space<vmem>>, %arg8: memref<2x6x32xf32, #tpu.memory_space<vmem>>, %arg9: memref<2x32xf32, #tpu.memory_space<vmem>>, %arg10: memref<16x32xf32, #tpu.memory_space<vmem>>) attributes {dimension_semantics = [], scalar_prefetch = 0 : i64, scratch_operands = 1 : i64, tpu.core_type = #tpu.core_type<tc>} {
    %c0 = arith.constant 0 : index
    %c0_0 = arith.constant 0 : index
    %0 = vector.load %arg0[%c0, %c0_0] : memref<16x32xf32, #tpu.memory_space<vmem>>, vector<16x32xf32>
    %c0_1 = arith.constant 0 : index
    %c0_2 = arith.constant 0 : index
    %1 = vector.load %arg10[%c0_1, %c0_2] : memref<16x32xf32, #tpu.memory_space<vmem>>, vector<16x32xf32>
    tpu.vector_store %arg10[%c0_1, %c0_2], %0 {strides = array<i32>} : memref<16x32xf32, #tpu.memory_space<vmem>>, vector<16x32xf32>,
    %c0_3 = arith.constant 0 : index
    %c0_4 = arith.constant 0 : index
    %2 = vector.load %arg1[%c0_3, %c0_4] : memref<2x8xf32, #tpu.memory_space<vmem>>, vector<2x8xf32>
    %c0_i32 = arith.constant 0 : i32
    %c0_5 = arith.constant 0 : index
    %c0_6 = arith.constant 0 : index
    %3 = vector.load %arg10[%c0_5, %c0_6] : memref<16x32xf32, #tpu.memory_space<vmem>>, vector<16x32xf32>
    %4 = arith.index_cast %c0_i32 : i32 to index
    %c0_7 = arith.constant 0 : index
    %c0_8 = arith.constant 0 : index
    %5 = vector.load %arg8[%4, %c0_7, %c0_8] : memref<2x6x32xf32, #tpu.memory_space<vmem>>, vector<1x6x32xf32>
    %6 = vector.shape_cast %5 : vector<1x6x32xf32> to vector<6x32xf32>
    %7 = arith.truncf %3 : vector<16x32xf32> to vector<16x32xbf16>
    %8 = arith.index_cast %c0_i32 : i32 to index
    %c0_9 = arith.constant 0 : index
    %c0_10 = arith.constant 0 : index
    %9 = vector.load %arg2[%8, %c0_9, %c0_10] : memref<2x32x96xbf16, #tpu.memory_space<vmem>>, vector<1x32x96xbf16>
    %10 = vector.shape_cast %9 : vector<1x32x96xbf16> to vector<32x96xbf16>
    %cst = arith.constant dense<0.000000e+00> : vector<16x96xf32>
    %11 = tpu.matmul %7, %10, %cst {dimension_numbers = #tpu.dot_dimension_numbers<[1], [0], [0], [1], [0, 0, 1, 1], [], []>} : vector<16x32xbf16>, vector<32x96xbf16>, vector<16x96xf32> -> vector<16x96xf32>
    %12 = arith.index_cast %c0_i32 : i32 to index
    %c0_11 = arith.constant 0 : index
    %c0_12 = arith.constant 0 : index
    %13 = vector.load %arg3[%12, %c0_11, %c0_12] : memref<2x1x96xf32, #tpu.memory_space<vmem>>, vector<1x1x96xf32>
    %14 = vector.shape_cast %13 : vector<1x1x96xf32> to vector<1x96xf32>
    %15 = vector.broadcast %14 : vector<1x96xf32> to vector<16x96xf32>
    %16 = arith.addf %11, %15 : vector<16x96xf32>
    %17 = arith.index_cast %c0_i32 : i32 to index
    %c0_13 = arith.constant 0 : index
    %c0_14 = arith.constant 0 : index
    %18 = vector.load %arg4[%17, %c0_13, %c0_14] : memref<2x32x32xbf16, #tpu.memory_space<vmem>>, vector<1x32x32xbf16>
    %19 = vector.shape_cast %18 : vector<1x32x32xbf16> to vector<32x32xbf16>
    %20 = vector.extract_strided_slice %2 {offsets = [0, 0], sizes = [1, 8], strides = [1, 1]} : vector<2x8xf32> to vector<1x8xf32>
    %cst_15 = arith.constant 0.000000e+00 : f32
    %21 = vector.broadcast %cst_15 : f32 to vector<8x32xf32>
    %22 = vector.extract_strided_slice %16 {offsets = [0, 0], sizes = [8, 16], strides = [1, 1]} : vector<16x96xf32> to vector<8x16xf32>
    %23 = vector.extract_strided_slice %16 {offsets = [0, 32], sizes = [8, 16], strides = [1, 1]} : vector<16x96xf32> to vector<8x16xf32>
    %24 = vector.extract_strided_slice %16 {offsets = [0, 64], sizes = [8, 16], strides = [1, 1]} : vector<16x96xf32> to vector<8x16xf32>
    %cst_16 = arith.constant dense<0.000000e+00> : vector<8x8xf32>
    %25 = tpu.matmul %22, %23, %cst_16 {dimension_numbers = #tpu.dot_dimension_numbers<[1], [1], [0], [0], [0, 0, 1, 0], [], []>} : vector<8x16xf32>, vector<8x16xf32>, vector<8x8xf32> -> vector<8x8xf32>
    %cst_17 = arith.constant 2.500000e-01 : f32
    %26 = vector.broadcast %cst_17 : f32 to vector<8x8xf32>
    %27 = arith.mulf %25, %26 : vector<8x8xf32>
    %28 = vector.broadcast %20 : vector<1x8xf32> to vector<8x8xf32>
    %29 = arith.addf %27, %28 : vector<8x8xf32>
    %cst_18 = arith.constant dense<0xFF800000> : vector<8xf32>
    %30 = vector.multi_reduction <maximumf>, %29, %cst_18 [1] : vector<8x8xf32> to vector<8xf32>
    %31 = vector.shape_cast %30 : vector<8xf32> to vector<8x1xf32>
    %32 = vector.broadcast %31 : vector<8x1xf32> to vector<8x8xf32>
    %33 = arith.subf %29, %32 : vector<8x8xf32>
    %34 = math.exp %33 : vector<8x8xf32>
    %cst_19 = arith.constant dense<0.000000e+00> : vector<8xf32>
    %35 = vector.multi_reduction <add>, %34, %cst_19 [1] : vector<8x8xf32> to vector<8xf32>
    %36 = vector.shape_cast %35 : vector<8xf32> to vector<8x1xf32>
    %37 = tpu.reciprocal %36 {approx = true} : vector<8x1xf32> -> vector<8x1xf32>
    %38 = vector.broadcast %37 : vector<8x1xf32> to vector<8x8xf32>
    %39 = arith.mulf %34, %38 : vector<8x8xf32>
    %cst_20 = arith.constant dense<0.000000e+00> : vector<8x16xf32>
    %40 = tpu.matmul %39, %24, %cst_20 {dimension_numbers = #tpu.dot_dimension_numbers<[1], [0], [0], [1], [0, 0, 1, 1], [], []>} : vector<8x8xf32>, vector<8x16xf32>, vector<8x16xf32> -> vector<8x16xf32>
    %41 = arith.truncf %40 : vector<8x16xf32> to vector<8x16xbf16>
    %42 = vector.extract_strided_slice %19 {offsets = [0, 0], sizes = [16, 32], strides = [1, 1]} : vector<32x32xbf16> to vector<16x32xbf16>
    %cst_21 = arith.constant dense<0.000000e+00> : vector<8x32xf32>
    %43 = tpu.matmul %41, %42, %cst_21 {dimension_numbers = #tpu.dot_dimension_numbers<[1], [0], [0], [1], [0, 0, 1, 1], [], []>} : vector<8x16xbf16>, vector<16x32xbf16>, vector<8x32xf32> -> vector<8x32xf32>
    %44 = arith.addf %21, %43 : vector<8x32xf32>
    %45 = vector.extract_strided_slice %16 {offsets = [0, 16], sizes = [8, 16], strides = [1, 1]} : vector<16x96xf32> to vector<8x16xf32>
    %46 = vector.extract_strided_slice %16 {offsets = [0, 48], sizes = [8, 16], strides = [1, 1]} : vector<16x96xf32> to vector<8x16xf32>
    %47 = vector.extract_strided_slice %16 {offsets = [0, 80], sizes = [8, 16], strides = [1, 1]} : vector<16x96xf32> to vector<8x16xf32>
    %cst_22 = arith.constant dense<0.000000e+00> : vector<8x8xf32>
    %48 = tpu.matmul %45, %46, %cst_22 {dimension_numbers = #tpu.dot_dimension_numbers<[1], [1], [0], [0], [0, 0, 1, 0], [], []>} : vector<8x16xf32>, vector<8x16xf32>, vector<8x8xf32> -> vector<8x8xf32>
    %cst_23 = arith.constant 2.500000e-01 : f32
    %49 = vector.broadcast %cst_23 : f32 to vector<8x8xf32>
    %50 = arith.mulf %48, %49 : vector<8x8xf32>
    %51 = vector.broadcast %20 : vector<1x8xf32> to vector<8x8xf32>
    %52 = arith.addf %50, %51 : vector<8x8xf32>
    %cst_24 = arith.constant dense<0xFF800000> : vector<8xf32>
    %53 = vector.multi_reduction <maximumf>, %52, %cst_24 [1] : vector<8x8xf32> to vector<8xf32>
    %54 = vector.shape_cast %53 : vector<8xf32> to vector<8x1xf32>
    %55 = vector.broadcast %54 : vector<8x1xf32> to vector<8x8xf32>
    %56 = arith.subf %52, %55 : vector<8x8xf32>
    %57 = math.exp %56 : vector<8x8xf32>
    %cst_25 = arith.constant dense<0.000000e+00> : vector<8xf32>
    %58 = vector.multi_reduction <add>, %57, %cst_25 [1] : vector<8x8xf32> to vector<8xf32>
    %59 = vector.shape_cast %58 : vector<8xf32> to vector<8x1xf32>
    %60 = tpu.reciprocal %59 {approx = true} : vector<8x1xf32> -> vector<8x1xf32>
    %61 = vector.broadcast %60 : vector<8x1xf32> to vector<8x8xf32>
    %62 = arith.mulf %57, %61 : vector<8x8xf32>
    %cst_26 = arith.constant dense<0.000000e+00> : vector<8x16xf32>
    %63 = tpu.matmul %62, %47, %cst_26 {dimension_numbers = #tpu.dot_dimension_numbers<[1], [0], [0], [1], [0, 0, 1, 1], [], []>} : vector<8x8xf32>, vector<8x16xf32>, vector<8x16xf32> -> vector<8x16xf32>
    %64 = arith.truncf %63 : vector<8x16xf32> to vector<8x16xbf16>
    %65 = vector.extract_strided_slice %19 {offsets = [16, 0], sizes = [16, 32], strides = [1, 1]} : vector<32x32xbf16> to vector<16x32xbf16>
    %cst_27 = arith.constant dense<0.000000e+00> : vector<8x32xf32>
    %66 = tpu.matmul %64, %65, %cst_27 {dimension_numbers = #tpu.dot_dimension_numbers<[1], [0], [0], [1], [0, 0, 1, 1], [], []>} : vector<8x16xbf16>, vector<16x32xbf16>, vector<8x32xf32> -> vector<8x32xf32>
    %67 = arith.addf %44, %66 : vector<8x32xf32>
    %68 = vector.extract_strided_slice %2 {offsets = [1, 0], sizes = [1, 8], strides = [1, 1]} : vector<2x8xf32> to vector<1x8xf32>
    %cst_28 = arith.constant 0.000000e+00 : f32
    %69 = vector.broadcast %cst_28 : f32 to vector<8x32xf32>
    %70 = vector.extract_strided_slice %16 {offsets = [8, 0], sizes = [8, 16], strides = [1, 1]} : vector<16x96xf32> to vector<8x16xf32>
    %71 = vector.extract_strided_slice %16 {offsets = [8, 32], sizes = [8, 16], strides = [1, 1]} : vector<16x96xf32> to vector<8x16xf32>
    %72 = vector.extract_strided_slice %16 {offsets = [8, 64], sizes = [8, 16], strides = [1, 1]} : vector<16x96xf32> to vector<8x16xf32>
    %cst_29 = arith.constant dense<0.000000e+00> : vector<8x8xf32>
    %73 = tpu.matmul %70, %71, %cst_29 {dimension_numbers = #tpu.dot_dimension_numbers<[1], [1], [0], [0], [0, 0, 1, 0], [], []>} : vector<8x16xf32>, vector<8x16xf32>, vector<8x8xf32> -> vector<8x8xf32>
    %cst_30 = arith.constant 2.500000e-01 : f32
    %74 = vector.broadcast %cst_30 : f32 to vector<8x8xf32>
    %75 = arith.mulf %73, %74 : vector<8x8xf32>
    %76 = vector.broadcast %68 : vector<1x8xf32> to vector<8x8xf32>
    %77 = arith.addf %75, %76 : vector<8x8xf32>
    %cst_31 = arith.constant dense<0xFF800000> : vector<8xf32>
    %78 = vector.multi_reduction <maximumf>, %77, %cst_31 [1] : vector<8x8xf32> to vector<8xf32>
    %79 = vector.shape_cast %78 : vector<8xf32> to vector<8x1xf32>
    %80 = vector.broadcast %79 : vector<8x1xf32> to vector<8x8xf32>
    %81 = arith.subf %77, %80 : vector<8x8xf32>
    %82 = math.exp %81 : vector<8x8xf32>
    %cst_32 = arith.constant dense<0.000000e+00> : vector<8xf32>
    %83 = vector.multi_reduction <add>, %82, %cst_32 [1] : vector<8x8xf32> to vector<8xf32>
    %84 = vector.shape_cast %83 : vector<8xf32> to vector<8x1xf32>
    %85 = tpu.reciprocal %84 {approx = true} : vector<8x1xf32> -> vector<8x1xf32>
    %86 = vector.broadcast %85 : vector<8x1xf32> to vector<8x8xf32>
    %87 = arith.mulf %82, %86 : vector<8x8xf32>
    %cst_33 = arith.constant dense<0.000000e+00> : vector<8x16xf32>
    %88 = tpu.matmul %87, %72, %cst_33 {dimension_numbers = #tpu.dot_dimension_numbers<[1], [0], [0], [1], [0, 0, 1, 1], [], []>} : vector<8x8xf32>, vector<8x16xf32>, vector<8x16xf32> -> vector<8x16xf32>
    %89 = arith.truncf %88 : vector<8x16xf32> to vector<8x16xbf16>
    %90 = vector.extract_strided_slice %19 {offsets = [0, 0], sizes = [16, 32], strides = [1, 1]} : vector<32x32xbf16> to vector<16x32xbf16>
    %cst_34 = arith.constant dense<0.000000e+00> : vector<8x32xf32>
    %91 = tpu.matmul %89, %90, %cst_34 {dimension_numbers = #tpu.dot_dimension_numbers<[1], [0], [0], [1], [0, 0, 1, 1], [], []>} : vector<8x16xbf16>, vector<16x32xbf16>, vector<8x32xf32> -> vector<8x32xf32>
    %92 = arith.addf %69, %91 : vector<8x32xf32>
    %93 = vector.extract_strided_slice %16 {offsets = [8, 16], sizes = [8, 16], strides = [1, 1]} : vector<16x96xf32> to vector<8x16xf32>
    %94 = vector.extract_strided_slice %16 {offsets = [8, 48], sizes = [8, 16], strides = [1, 1]} : vector<16x96xf32> to vector<8x16xf32>
    %95 = vector.extract_strided_slice %16 {offsets = [8, 80], sizes = [8, 16], strides = [1, 1]} : vector<16x96xf32> to vector<8x16xf32>
    %cst_35 = arith.constant dense<0.000000e+00> : vector<8x8xf32>
    %96 = tpu.matmul %93, %94, %cst_35 {dimension_numbers = #tpu.dot_dimension_numbers<[1], [1], [0], [0], [0, 0, 1, 0], [], []>} : vector<8x16xf32>, vector<8x16xf32>, vector<8x8xf32> -> vector<8x8xf32>
    %cst_36 = arith.constant 2.500000e-01 : f32
    %97 = vector.broadcast %cst_36 : f32 to vector<8x8xf32>
    %98 = arith.mulf %96, %97 : vector<8x8xf32>
    %99 = vector.broadcast %68 : vector<1x8xf32> to vector<8x8xf32>
    %100 = arith.addf %98, %99 : vector<8x8xf32>
    %cst_37 = arith.constant dense<0xFF800000> : vector<8xf32>
    %101 = vector.multi_reduction <maximumf>, %100, %cst_37 [1] : vector<8x8xf32> to vector<8xf32>
    %102 = vector.shape_cast %101 : vector<8xf32> to vector<8x1xf32>
    %103 = vector.broadcast %102 : vector<8x1xf32> to vector<8x8xf32>
    %104 = arith.subf %100, %103 : vector<8x8xf32>
    %105 = math.exp %104 : vector<8x8xf32>
    %cst_38 = arith.constant dense<0.000000e+00> : vector<8xf32>
    %106 = vector.multi_reduction <add>, %105, %cst_38 [1] : vector<8x8xf32> to vector<8xf32>
    %107 = vector.shape_cast %106 : vector<8xf32> to vector<8x1xf32>
    %108 = tpu.reciprocal %107 {approx = true} : vector<8x1xf32> -> vector<8x1xf32>
    %109 = vector.broadcast %108 : vector<8x1xf32> to vector<8x8xf32>
    %110 = arith.mulf %105, %109 : vector<8x8xf32>
    %cst_39 = arith.constant dense<0.000000e+00> : vector<8x16xf32>
    %111 = tpu.matmul %110, %95, %cst_39 {dimension_numbers = #tpu.dot_dimension_numbers<[1], [0], [0], [1], [0, 0, 1, 1], [], []>} : vector<8x8xf32>, vector<8x16xf32>, vector<8x16xf32> -> vector<8x16xf32>
    %112 = arith.truncf %111 : vector<8x16xf32> to vector<8x16xbf16>
    %113 = vector.extract_strided_slice %19 {offsets = [16, 0], sizes = [16, 32], strides = [1, 1]} : vector<32x32xbf16> to vector<16x32xbf16>
    %cst_40 = arith.constant dense<0.000000e+00> : vector<8x32xf32>
    %114 = tpu.matmul %112, %113, %cst_40 {dimension_numbers = #tpu.dot_dimension_numbers<[1], [0], [0], [1], [0, 0, 1, 1], [], []>} : vector<8x16xbf16>, vector<16x32xbf16>, vector<8x32xf32> -> vector<8x32xf32>
    %115 = arith.addf %92, %114 : vector<8x32xf32>
    %116 = tpu.concatenate %67, %115 in 0 : vector<8x32xf32>, vector<8x32xf32> -> vector<16x32xf32>
    %117 = vector.extract_strided_slice %6 {offsets = [0, 0], sizes = [1, 32], strides = [1, 1]} : vector<6x32xf32> to vector<1x32xf32>
    %118 = vector.broadcast %117 : vector<1x32xf32> to vector<16x32xf32>
    %119 = arith.addf %116, %118 : vector<16x32xf32>
    %120 = arith.addf %3, %119 : vector<16x32xf32>
    %121 = vector.extract_strided_slice %6 {offsets = [2, 0], sizes = [1, 32], strides = [1, 1]} : vector<6x32xf32> to vector<1x32xf32>
    %122 = vector.extract_strided_slice %6 {offsets = [3, 0], sizes = [1, 32], strides = [1, 1]} : vector<6x32xf32> to vector<1x32xf32>
    %cst_41 = arith.constant dense<0.000000e+00> : vector<16xf32>
    %123 = vector.multi_reduction <add>, %120, %cst_41 [1] : vector<16x32xf32> to vector<16xf32>
    %124 = vector.shape_cast %123 : vector<16xf32> to vector<16x1xf32>
    %cst_42 = arith.constant 3.200000e+01 : f32
    %125 = vector.broadcast %cst_42 : f32 to vector<16x1xf32>
    %126 = arith.divf %124, %125 : vector<16x1xf32>
    %127 = vector.broadcast %126 : vector<16x1xf32> to vector<16x32xf32>
    %128 = arith.subf %120, %127 : vector<16x32xf32>
    %129 = arith.mulf %128, %128 : vector<16x32xf32>
    %cst_43 = arith.constant dense<0.000000e+00> : vector<16xf32>
    %130 = vector.multi_reduction <add>, %129, %cst_43 [1] : vector<16x32xf32> to vector<16xf32>
    %131 = vector.shape_cast %130 : vector<16xf32> to vector<16x1xf32>
    %cst_44 = arith.constant 3.200000e+01 : f32
    %132 = vector.broadcast %cst_44 : f32 to vector<16x1xf32>
    %133 = arith.divf %131, %132 : vector<16x1xf32>
    %134 = vector.broadcast %126 : vector<16x1xf32> to vector<16x32xf32>
    %135 = arith.subf %120, %134 : vector<16x32xf32>
    %cst_45 = arith.constant 9.99999996E-13 : f32
    %136 = vector.broadcast %cst_45 : f32 to vector<16x1xf32>
    %137 = arith.addf %133, %136 : vector<16x1xf32>
    %138 = math.rsqrt %137 : vector<16x1xf32>
    %139 = vector.broadcast %138 : vector<16x1xf32> to vector<16x32xf32>
    %140 = arith.mulf %135, %139 : vector<16x32xf32>
    %141 = vector.broadcast %121 : vector<1x32xf32> to vector<16x32xf32>
    %142 = arith.mulf %140, %141 : vector<16x32xf32>
    %143 = vector.broadcast %122 : vector<1x32xf32> to vector<16x32xf32>
    %144 = arith.addf %142, %143 : vector<16x32xf32>
    %145 = arith.truncf %144 : vector<16x32xf32> to vector<16x32xbf16>
    %146 = arith.index_cast %c0_i32 : i32 to index
    %c0_46 = arith.constant 0 : index
    %c0_47 = arith.constant 0 : index
    %147 = vector.load %arg5[%146, %c0_46, %c0_47] : memref<2x32x64xbf16, #tpu.memory_space<vmem>>, vector<1x32x64xbf16>
    %148 = vector.shape_cast %147 : vector<1x32x64xbf16> to vector<32x64xbf16>
    %cst_48 = arith.constant dense<0.000000e+00> : vector<16x64xf32>
    %149 = tpu.matmul %145, %148, %cst_48 {dimension_numbers = #tpu.dot_dimension_numbers<[1], [0], [0], [1], [0, 0, 1, 1], [], []>} : vector<16x32xbf16>, vector<32x64xbf16>, vector<16x64xf32> -> vector<16x64xf32>
    %150 = arith.index_cast %c0_i32 : i32 to index
    %c0_49 = arith.constant 0 : index
    %c0_50 = arith.constant 0 : index
    %151 = vector.load %arg6[%150, %c0_49, %c0_50] : memref<2x1x64xf32, #tpu.memory_space<vmem>>, vector<1x1x64xf32>
    %152 = vector.shape_cast %151 : vector<1x1x64xf32> to vector<1x64xf32>
    %153 = vector.broadcast %152 : vector<1x64xf32> to vector<16x64xf32>
    %154 = arith.addf %149, %153 : vector<16x64xf32>
    %cst_51 = arith.constant 5.000000e-01 : f32
    %155 = vector.broadcast %cst_51 : f32 to vector<16x64xf32>
    %156 = arith.mulf %155, %154 : vector<16x64xf32>
    %157 = arith.mulf %154, %154 : vector<16x64xf32>
    %158 = arith.mulf %157, %154 : vector<16x64xf32>
    %cst_52 = arith.constant 4.471500e-02 : f32
    %159 = vector.broadcast %cst_52 : f32 to vector<16x64xf32>
    %160 = arith.mulf %159, %158 : vector<16x64xf32>
    %161 = arith.addf %154, %160 : vector<16x64xf32>
    %cst_53 = arith.constant 0.797884583 : f32
    %162 = vector.broadcast %cst_53 : f32 to vector<16x64xf32>
    %163 = arith.mulf %162, %161 : vector<16x64xf32>
    %164 = math.tanh %163 : vector<16x64xf32>
    %cst_54 = arith.constant 1.000000e+00 : f32
    %165 = vector.broadcast %cst_54 : f32 to vector<16x64xf32>
    %166 = arith.addf %165, %164 : vector<16x64xf32>
    %167 = arith.mulf %156, %166 : vector<16x64xf32>
    %168 = arith.truncf %167 : vector<16x64xf32> to vector<16x64xbf16>
    %169 = arith.index_cast %c0_i32 : i32 to index
    %c0_55 = arith.constant 0 : index
    %c0_56 = arith.constant 0 : index
    %170 = vector.load %arg7[%169, %c0_55, %c0_56] : memref<2x64x32xbf16, #tpu.memory_space<vmem>>, vector<1x64x32xbf16>
    %171 = vector.shape_cast %170 : vector<1x64x32xbf16> to vector<64x32xbf16>
    %cst_57 = arith.constant dense<0.000000e+00> : vector<16x32xf32>
    %172 = tpu.matmul %168, %171, %cst_57 {dimension_numbers = #tpu.dot_dimension_numbers<[1], [0], [0], [1], [0, 0, 1, 1], [], []>} : vector<16x64xbf16>, vector<64x32xbf16>, vector<16x32xf32> -> vector<16x32xf32>
    %173 = vector.extract_strided_slice %6 {offsets = [1, 0], sizes = [1, 32], strides = [1, 1]} : vector<6x32xf32> to vector<1x32xf32>
    %174 = vector.broadcast %173 : vector<1x32xf32> to vector<16x32xf32>
    %175 = arith.addf %172, %174 : vector<16x32xf32>
    %176 = arith.addf %144, %175 : vector<16x32xf32>
    %177 = vector.extract_strided_slice %6 {offsets = [4, 0], sizes = [1, 32], strides = [1, 1]} : vector<6x32xf32> to vector<1x32xf32>
    %178 = vector.extract_strided_slice %6 {offsets = [5, 0], sizes = [1, 32], strides = [1, 1]} : vector<6x32xf32> to vector<1x32xf32>
    %cst_58 = arith.constant dense<0.000000e+00> : vector<16xf32>
    %179 = vector.multi_reduction <add>, %176, %cst_58 [1] : vector<16x32xf32> to vector<16xf32>
    %180 = vector.shape_cast %179 : vector<16xf32> to vector<16x1xf32>
    %cst_59 = arith.constant 3.200000e+01 : f32
    %181 = vector.broadcast %cst_59 : f32 to vector<16x1xf32>
    %182 = arith.divf %180, %181 : vector<16x1xf32>
    %183 = vector.broadcast %182 : vector<16x1xf32> to vector<16x32xf32>
    %184 = arith.subf %176, %183 : vector<16x32xf32>
    %185 = arith.mulf %184, %184 : vector<16x32xf32>
    %cst_60 = arith.constant dense<0.000000e+00> : vector<16xf32>
    %186 = vector.multi_reduction <add>, %185, %cst_60 [1] : vector<16x32xf32> to vector<16xf32>
    %187 = vector.shape_cast %186 : vector<16xf32> to vector<16x1xf32>
    %cst_61 = arith.constant 3.200000e+01 : f32
    %188 = vector.broadcast %cst_61 : f32 to vector<16x1xf32>
    %189 = arith.divf %187, %188 : vector<16x1xf32>
    %190 = vector.broadcast %182 : vector<16x1xf32> to vector<16x32xf32>
    %191 = arith.subf %176, %190 : vector<16x32xf32>
    %cst_62 = arith.constant 9.99999996E-13 : f32
    %192 = vector.broadcast %cst_62 : f32 to vector<16x1xf32>
    %193 = arith.addf %189, %192 : vector<16x1xf32>
    %194 = math.rsqrt %193 : vector<16x1xf32>
    %195 = vector.broadcast %194 : vector<16x1xf32> to vector<16x32xf32>
    %196 = arith.mulf %191, %195 : vector<16x32xf32>
    %197 = vector.broadcast %177 : vector<1x32xf32> to vector<16x32xf32>
    %198 = arith.mulf %196, %197 : vector<16x32xf32>
    %199 = vector.broadcast %178 : vector<1x32xf32> to vector<16x32xf32>
    %200 = arith.addf %198, %199 : vector<16x32xf32>
    %c0_63 = arith.constant 0 : index
    %c0_64 = arith.constant 0 : index
    %201 = vector.load %arg10[%c0_63, %c0_64] : memref<16x32xf32, #tpu.memory_space<vmem>>, vector<16x32xf32>
    tpu.vector_store %arg10[%c0_63, %c0_64], %200 {strides = array<i32>} : memref<16x32xf32, #tpu.memory_space<vmem>>, vector<16x32xf32>,
    %c1_i32 = arith.constant 1 : i32
    %c0_65 = arith.constant 0 : index
    %c0_66 = arith.constant 0 : index
    %202 = vector.load %arg10[%c0_65, %c0_66] : memref<16x32xf32, #tpu.memory_space<vmem>>, vector<16x32xf32>
    %203 = arith.index_cast %c1_i32 : i32 to index
    %c0_67 = arith.constant 0 : index
    %c0_68 = arith.constant 0 : index
    %204 = vector.load %arg8[%203, %c0_67, %c0_68] : memref<2x6x32xf32, #tpu.memory_space<vmem>>, vector<1x6x32xf32>
    %205 = vector.shape_cast %204 : vector<1x6x32xf32> to vector<6x32xf32>
    %206 = arith.truncf %202 : vector<16x32xf32> to vector<16x32xbf16>
    %207 = arith.index_cast %c1_i32 : i32 to index
    %c0_69 = arith.constant 0 : index
    %c0_70 = arith.constant 0 : index
    %208 = vector.load %arg2[%207, %c0_69, %c0_70] : memref<2x32x96xbf16, #tpu.memory_space<vmem>>, vector<1x32x96xbf16>
    %209 = vector.shape_cast %208 : vector<1x32x96xbf16> to vector<32x96xbf16>
    %cst_71 = arith.constant dense<0.000000e+00> : vector<16x96xf32>
    %210 = tpu.matmul %206, %209, %cst_71 {dimension_numbers = #tpu.dot_dimension_numbers<[1], [0], [0], [1], [0, 0, 1, 1], [], []>} : vector<16x32xbf16>, vector<32x96xbf16>, vector<16x96xf32> -> vector<16x96xf32>
    %211 = arith.index_cast %c1_i32 : i32 to index
    %c0_72 = arith.constant 0 : index
    %c0_73 = arith.constant 0 : index
    %212 = vector.load %arg3[%211, %c0_72, %c0_73] : memref<2x1x96xf32, #tpu.memory_space<vmem>>, vector<1x1x96xf32>
    %213 = vector.shape_cast %212 : vector<1x1x96xf32> to vector<1x96xf32>
    %214 = vector.broadcast %213 : vector<1x96xf32> to vector<16x96xf32>
    %215 = arith.addf %210, %214 : vector<16x96xf32>
    %216 = arith.index_cast %c1_i32 : i32 to index
    %c0_74 = arith.constant 0 : index
    %c0_75 = arith.constant 0 : index
    %217 = vector.load %arg4[%216, %c0_74, %c0_75] : memref<2x32x32xbf16, #tpu.memory_space<vmem>>, vector<1x32x32xbf16>
    %218 = vector.shape_cast %217 : vector<1x32x32xbf16> to vector<32x32xbf16>
    %219 = vector.extract_strided_slice %2 {offsets = [0, 0], sizes = [1, 8], strides = [1, 1]} : vector<2x8xf32> to vector<1x8xf32>
    %cst_76 = arith.constant 0.000000e+00 : f32
    %220 = vector.broadcast %cst_76 : f32 to vector<8x32xf32>
    %221 = vector.extract_strided_slice %215 {offsets = [0, 0], sizes = [8, 16], strides = [1, 1]} : vector<16x96xf32> to vector<8x16xf32>
    %222 = vector.extract_strided_slice %215 {offsets = [0, 32], sizes = [8, 16], strides = [1, 1]} : vector<16x96xf32> to vector<8x16xf32>
    %223 = vector.extract_strided_slice %215 {offsets = [0, 64], sizes = [8, 16], strides = [1, 1]} : vector<16x96xf32> to vector<8x16xf32>
    %cst_77 = arith.constant dense<0.000000e+00> : vector<8x8xf32>
    %224 = tpu.matmul %221, %222, %cst_77 {dimension_numbers = #tpu.dot_dimension_numbers<[1], [1], [0], [0], [0, 0, 1, 0], [], []>} : vector<8x16xf32>, vector<8x16xf32>, vector<8x8xf32> -> vector<8x8xf32>
    %cst_78 = arith.constant 2.500000e-01 : f32
    %225 = vector.broadcast %cst_78 : f32 to vector<8x8xf32>
    %226 = arith.mulf %224, %225 : vector<8x8xf32>
    %227 = vector.broadcast %219 : vector<1x8xf32> to vector<8x8xf32>
    %228 = arith.addf %226, %227 : vector<8x8xf32>
    %cst_79 = arith.constant dense<0xFF800000> : vector<8xf32>
    %229 = vector.multi_reduction <maximumf>, %228, %cst_79 [1] : vector<8x8xf32> to vector<8xf32>
    %230 = vector.shape_cast %229 : vector<8xf32> to vector<8x1xf32>
    %231 = vector.broadcast %230 : vector<8x1xf32> to vector<8x8xf32>
    %232 = arith.subf %228, %231 : vector<8x8xf32>
    %233 = math.exp %232 : vector<8x8xf32>
    %cst_80 = arith.constant dense<0.000000e+00> : vector<8xf32>
    %234 = vector.multi_reduction <add>, %233, %cst_80 [1] : vector<8x8xf32> to vector<8xf32>
    %235 = vector.shape_cast %234 : vector<8xf32> to vector<8x1xf32>
    %236 = tpu.reciprocal %235 {approx = true} : vector<8x1xf32> -> vector<8x1xf32>
    %237 = vector.broadcast %236 : vector<8x1xf32> to vector<8x8xf32>
    %238 = arith.mulf %233, %237 : vector<8x8xf32>
    %cst_81 = arith.constant dense<0.000000e+00> : vector<8x16xf32>
    %239 = tpu.matmul %238, %223, %cst_81 {dimension_numbers = #tpu.dot_dimension_numbers<[1], [0], [0], [1], [0, 0, 1, 1], [], []>} : vector<8x8xf32>, vector<8x16xf32>, vector<8x16xf32> -> vector<8x16xf32>
    %240 = arith.truncf %239 : vector<8x16xf32> to vector<8x16xbf16>
    %241 = vector.extract_strided_slice %218 {offsets = [0, 0], sizes = [16, 32], strides = [1, 1]} : vector<32x32xbf16> to vector<16x32xbf16>
    %cst_82 = arith.constant dense<0.000000e+00> : vector<8x32xf32>
    %242 = tpu.matmul %240, %241, %cst_82 {dimension_numbers = #tpu.dot_dimension_numbers<[1], [0], [0], [1], [0, 0, 1, 1], [], []>} : vector<8x16xbf16>, vector<16x32xbf16>, vector<8x32xf32> -> vector<8x32xf32>
    %243 = arith.addf %220, %242 : vector<8x32xf32>
    %244 = vector.extract_strided_slice %215 {offsets = [0, 16], sizes = [8, 16], strides = [1, 1]} : vector<16x96xf32> to vector<8x16xf32>
    %245 = vector.extract_strided_slice %215 {offsets = [0, 48], sizes = [8, 16], strides = [1, 1]} : vector<16x96xf32> to vector<8x16xf32>
    %246 = vector.extract_strided_slice %215 {offsets = [0, 80], sizes = [8, 16], strides = [1, 1]} : vector<16x96xf32> to vector<8x16xf32>
    %cst_83 = arith.constant dense<0.000000e+00> : vector<8x8xf32>
    %247 = tpu.matmul %244, %245, %cst_83 {dimension_numbers = #tpu.dot_dimension_numbers<[1], [1], [0], [0], [0, 0, 1, 0], [], []>} : vector<8x16xf32>, vector<8x16xf32>, vector<8x8xf32> -> vector<8x8xf32>
    %cst_84 = arith.constant 2.500000e-01 : f32
    %248 = vector.broadcast %cst_84 : f32 to vector<8x8xf32>
    %249 = arith.mulf %247, %248 : vector<8x8xf32>
    %250 = vector.broadcast %219 : vector<1x8xf32> to vector<8x8xf32>
    %251 = arith.addf %249, %250 : vector<8x8xf32>
    %cst_85 = arith.constant dense<0xFF800000> : vector<8xf32>
    %252 = vector.multi_reduction <maximumf>, %251, %cst_85 [1] : vector<8x8xf32> to vector<8xf32>
    %253 = vector.shape_cast %252 : vector<8xf32> to vector<8x1xf32>
    %254 = vector.broadcast %253 : vector<8x1xf32> to vector<8x8xf32>
    %255 = arith.subf %251, %254 : vector<8x8xf32>
    %256 = math.exp %255 : vector<8x8xf32>
    %cst_86 = arith.constant dense<0.000000e+00> : vector<8xf32>
    %257 = vector.multi_reduction <add>, %256, %cst_86 [1] : vector<8x8xf32> to vector<8xf32>
    %258 = vector.shape_cast %257 : vector<8xf32> to vector<8x1xf32>
    %259 = tpu.reciprocal %258 {approx = true} : vector<8x1xf32> -> vector<8x1xf32>
    %260 = vector.broadcast %259 : vector<8x1xf32> to vector<8x8xf32>
    %261 = arith.mulf %256, %260 : vector<8x8xf32>
    %cst_87 = arith.constant dense<0.000000e+00> : vector<8x16xf32>
    %262 = tpu.matmul %261, %246, %cst_87 {dimension_numbers = #tpu.dot_dimension_numbers<[1], [0], [0], [1], [0, 0, 1, 1], [], []>} : vector<8x8xf32>, vector<8x16xf32>, vector<8x16xf32> -> vector<8x16xf32>
    %263 = arith.truncf %262 : vector<8x16xf32> to vector<8x16xbf16>
    %264 = vector.extract_strided_slice %218 {offsets = [16, 0], sizes = [16, 32], strides = [1, 1]} : vector<32x32xbf16> to vector<16x32xbf16>
    %cst_88 = arith.constant dense<0.000000e+00> : vector<8x32xf32>
    %265 = tpu.matmul %263, %264, %cst_88 {dimension_numbers = #tpu.dot_dimension_numbers<[1], [0], [0], [1], [0, 0, 1, 1], [], []>} : vector<8x16xbf16>, vector<16x32xbf16>, vector<8x32xf32> -> vector<8x32xf32>
    %266 = arith.addf %243, %265 : vector<8x32xf32>
    %267 = vector.extract_strided_slice %2 {offsets = [1, 0], sizes = [1, 8], strides = [1, 1]} : vector<2x8xf32> to vector<1x8xf32>
    %cst_89 = arith.constant 0.000000e+00 : f32
    %268 = vector.broadcast %cst_89 : f32 to vector<8x32xf32>
    %269 = vector.extract_strided_slice %215 {offsets = [8, 0], sizes = [8, 16], strides = [1, 1]} : vector<16x96xf32> to vector<8x16xf32>
    %270 = vector.extract_strided_slice %215 {offsets = [8, 32], sizes = [8, 16], strides = [1, 1]} : vector<16x96xf32> to vector<8x16xf32>
    %271 = vector.extract_strided_slice %215 {offsets = [8, 64], sizes = [8, 16], strides = [1, 1]} : vector<16x96xf32> to vector<8x16xf32>
    %cst_90 = arith.constant dense<0.000000e+00> : vector<8x8xf32>
    %272 = tpu.matmul %269, %270, %cst_90 {dimension_numbers = #tpu.dot_dimension_numbers<[1], [1], [0], [0], [0, 0, 1, 0], [], []>} : vector<8x16xf32>, vector<8x16xf32>, vector<8x8xf32> -> vector<8x8xf32>
    %cst_91 = arith.constant 2.500000e-01 : f32
    %273 = vector.broadcast %cst_91 : f32 to vector<8x8xf32>
    %274 = arith.mulf %272, %273 : vector<8x8xf32>
    %275 = vector.broadcast %267 : vector<1x8xf32> to vector<8x8xf32>
    %276 = arith.addf %274, %275 : vector<8x8xf32>
    %cst_92 = arith.constant dense<0xFF800000> : vector<8xf32>
    %277 = vector.multi_reduction <maximumf>, %276, %cst_92 [1] : vector<8x8xf32> to vector<8xf32>
    %278 = vector.shape_cast %277 : vector<8xf32> to vector<8x1xf32>
    %279 = vector.broadcast %278 : vector<8x1xf32> to vector<8x8xf32>
    %280 = arith.subf %276, %279 : vector<8x8xf32>
    %281 = math.exp %280 : vector<8x8xf32>
    %cst_93 = arith.constant dense<0.000000e+00> : vector<8xf32>
    %282 = vector.multi_reduction <add>, %281, %cst_93 [1] : vector<8x8xf32> to vector<8xf32>
    %283 = vector.shape_cast %282 : vector<8xf32> to vector<8x1xf32>
    %284 = tpu.reciprocal %283 {approx = true} : vector<8x1xf32> -> vector<8x1xf32>
    %285 = vector.broadcast %284 : vector<8x1xf32> to vector<8x8xf32>
    %286 = arith.mulf %281, %285 : vector<8x8xf32>
    %cst_94 = arith.constant dense<0.000000e+00> : vector<8x16xf32>
    %287 = tpu.matmul %286, %271, %cst_94 {dimension_numbers = #tpu.dot_dimension_numbers<[1], [0], [0], [1], [0, 0, 1, 1], [], []>} : vector<8x8xf32>, vector<8x16xf32>, vector<8x16xf32> -> vector<8x16xf32>
    %288 = arith.truncf %287 : vector<8x16xf32> to vector<8x16xbf16>
    %289 = vector.extract_strided_slice %218 {offsets = [0, 0], sizes = [16, 32], strides = [1, 1]} : vector<32x32xbf16> to vector<16x32xbf16>
    %cst_95 = arith.constant dense<0.000000e+00> : vector<8x32xf32>
    %290 = tpu.matmul %288, %289, %cst_95 {dimension_numbers = #tpu.dot_dimension_numbers<[1], [0], [0], [1], [0, 0, 1, 1], [], []>} : vector<8x16xbf16>, vector<16x32xbf16>, vector<8x32xf32> -> vector<8x32xf32>
    %291 = arith.addf %268, %290 : vector<8x32xf32>
    %292 = vector.extract_strided_slice %215 {offsets = [8, 16], sizes = [8, 16], strides = [1, 1]} : vector<16x96xf32> to vector<8x16xf32>
    %293 = vector.extract_strided_slice %215 {offsets = [8, 48], sizes = [8, 16], strides = [1, 1]} : vector<16x96xf32> to vector<8x16xf32>
    %294 = vector.extract_strided_slice %215 {offsets = [8, 80], sizes = [8, 16], strides = [1, 1]} : vector<16x96xf32> to vector<8x16xf32>
    %cst_96 = arith.constant dense<0.000000e+00> : vector<8x8xf32>
    %295 = tpu.matmul %292, %293, %cst_96 {dimension_numbers = #tpu.dot_dimension_numbers<[1], [1], [0], [0], [0, 0, 1, 0], [], []>} : vector<8x16xf32>, vector<8x16xf32>, vector<8x8xf32> -> vector<8x8xf32>
    %cst_97 = arith.constant 2.500000e-01 : f32
    %296 = vector.broadcast %cst_97 : f32 to vector<8x8xf32>
    %297 = arith.mulf %295, %296 : vector<8x8xf32>
    %298 = vector.broadcast %267 : vector<1x8xf32> to vector<8x8xf32>
    %299 = arith.addf %297, %298 : vector<8x8xf32>
    %cst_98 = arith.constant dense<0xFF800000> : vector<8xf32>
    %300 = vector.multi_reduction <maximumf>, %299, %cst_98 [1] : vector<8x8xf32> to vector<8xf32>
    %301 = vector.shape_cast %300 : vector<8xf32> to vector<8x1xf32>
    %302 = vector.broadcast %301 : vector<8x1xf32> to vector<8x8xf32>
    %303 = arith.subf %299, %302 : vector<8x8xf32>
    %304 = math.exp %303 : vector<8x8xf32>
    %cst_99 = arith.constant dense<0.000000e+00> : vector<8xf32>
    %305 = vector.multi_reduction <add>, %304, %cst_99 [1] : vector<8x8xf32> to vector<8xf32>
    %306 = vector.shape_cast %305 : vector<8xf32> to vector<8x1xf32>
    %307 = tpu.reciprocal %306 {approx = true} : vector<8x1xf32> -> vector<8x1xf32>
    %308 = vector.broadcast %307 : vector<8x1xf32> to vector<8x8xf32>
    %309 = arith.mulf %304, %308 : vector<8x8xf32>
    %cst_100 = arith.constant dense<0.000000e+00> : vector<8x16xf32>
    %310 = tpu.matmul %309, %294, %cst_100 {dimension_numbers = #tpu.dot_dimension_numbers<[1], [0], [0], [1], [0, 0, 1, 1], [], []>} : vector<8x8xf32>, vector<8x16xf32>, vector<8x16xf32> -> vector<8x16xf32>
    %311 = arith.truncf %310 : vector<8x16xf32> to vector<8x16xbf16>
    %312 = vector.extract_strided_slice %218 {offsets = [16, 0], sizes = [16, 32], strides = [1, 1]} : vector<32x32xbf16> to vector<16x32xbf16>
    %cst_101 = arith.constant dense<0.000000e+00> : vector<8x32xf32>
    %313 = tpu.matmul %311, %312, %cst_101 {dimension_numbers = #tpu.dot_dimension_numbers<[1], [0], [0], [1], [0, 0, 1, 1], [], []>} : vector<8x16xbf16>, vector<16x32xbf16>, vector<8x32xf32> -> vector<8x32xf32>
    %314 = arith.addf %291, %313 : vector<8x32xf32>
    %315 = tpu.concatenate %266, %314 in 0 : vector<8x32xf32>, vector<8x32xf32> -> vector<16x32xf32>
    %316 = vector.extract_strided_slice %205 {offsets = [0, 0], sizes = [1, 32], strides = [1, 1]} : vector<6x32xf32> to vector<1x32xf32>
    %317 = vector.broadcast %316 : vector<1x32xf32> to vector<16x32xf32>
    %318 = arith.addf %315, %317 : vector<16x32xf32>
    %319 = arith.addf %202, %318 : vector<16x32xf32>
    %320 = vector.extract_strided_slice %205 {offsets = [2, 0], sizes = [1, 32], strides = [1, 1]} : vector<6x32xf32> to vector<1x32xf32>
    %321 = vector.extract_strided_slice %205 {offsets = [3, 0], sizes = [1, 32], strides = [1, 1]} : vector<6x32xf32> to vector<1x32xf32>
    %cst_102 = arith.constant dense<0.000000e+00> : vector<16xf32>
    %322 = vector.multi_reduction <add>, %319, %cst_102 [1] : vector<16x32xf32> to vector<16xf32>
    %323 = vector.shape_cast %322 : vector<16xf32> to vector<16x1xf32>
    %cst_103 = arith.constant 3.200000e+01 : f32
    %324 = vector.broadcast %cst_103 : f32 to vector<16x1xf32>
    %325 = arith.divf %323, %324 : vector<16x1xf32>
    %326 = vector.broadcast %325 : vector<16x1xf32> to vector<16x32xf32>
    %327 = arith.subf %319, %326 : vector<16x32xf32>
    %328 = arith.mulf %327, %327 : vector<16x32xf32>
    %cst_104 = arith.constant dense<0.000000e+00> : vector<16xf32>
    %329 = vector.multi_reduction <add>, %328, %cst_104 [1] : vector<16x32xf32> to vector<16xf32>
    %330 = vector.shape_cast %329 : vector<16xf32> to vector<16x1xf32>
    %cst_105 = arith.constant 3.200000e+01 : f32
    %331 = vector.broadcast %cst_105 : f32 to vector<16x1xf32>
    %332 = arith.divf %330, %331 : vector<16x1xf32>
    %333 = vector.broadcast %325 : vector<16x1xf32> to vector<16x32xf32>
    %334 = arith.subf %319, %333 : vector<16x32xf32>
    %cst_106 = arith.constant 9.99999996E-13 : f32
    %335 = vector.broadcast %cst_106 : f32 to vector<16x1xf32>
    %336 = arith.addf %332, %335 : vector<16x1xf32>
    %337 = math.rsqrt %336 : vector<16x1xf32>
    %338 = vector.broadcast %337 : vector<16x1xf32> to vector<16x32xf32>
    %339 = arith.mulf %334, %338 : vector<16x32xf32>
    %340 = vector.broadcast %320 : vector<1x32xf32> to vector<16x32xf32>
    %341 = arith.mulf %339, %340 : vector<16x32xf32>
    %342 = vector.broadcast %321 : vector<1x32xf32> to vector<16x32xf32>
    %343 = arith.addf %341, %342 : vector<16x32xf32>
    %344 = arith.truncf %343 : vector<16x32xf32> to vector<16x32xbf16>
    %345 = arith.index_cast %c1_i32 : i32 to index
    %c0_107 = arith.constant 0 : index
    %c0_108 = arith.constant 0 : index
    %346 = vector.load %arg5[%345, %c0_107, %c0_108] : memref<2x32x64xbf16, #tpu.memory_space<vmem>>, vector<1x32x64xbf16>
    %347 = vector.shape_cast %346 : vector<1x32x64xbf16> to vector<32x64xbf16>
    %cst_109 = arith.constant dense<0.000000e+00> : vector<16x64xf32>
    %348 = tpu.matmul %344, %347, %cst_109 {dimension_numbers = #tpu.dot_dimension_numbers<[1], [0], [0], [1], [0, 0, 1, 1], [], []>} : vector<16x32xbf16>, vector<32x64xbf16>, vector<16x64xf32> -> vector<16x64xf32>
    %349 = arith.index_cast %c1_i32 : i32 to index
    %c0_110 = arith.constant 0 : index
    %c0_111 = arith.constant 0 : index
    %350 = vector.load %arg6[%349, %c0_110, %c0_111] : memref<2x1x64xf32, #tpu.memory_space<vmem>>, vector<1x1x64xf32>
    %351 = vector.shape_cast %350 : vector<1x1x64xf32> to vector<1x64xf32>
    %352 = vector.broadcast %351 : vector<1x64xf32> to vector<16x64xf32>
    %353 = arith.addf %348, %352 : vector<16x64xf32>
    %cst_112 = arith.constant 5.000000e-01 : f32
    %354 = vector.broadcast %cst_112 : f32 to vector<16x64xf32>
    %355 = arith.mulf %354, %353 : vector<16x64xf32>
    %356 = arith.mulf %353, %353 : vector<16x64xf32>
    %357 = arith.mulf %356, %353 : vector<16x64xf32>
    %cst_113 = arith.constant 4.471500e-02 : f32
    %358 = vector.broadcast %cst_113 : f32 to vector<16x64xf32>
    %359 = arith.mulf %358, %357 : vector<16x64xf32>
    %360 = arith.addf %353, %359 : vector<16x64xf32>
    %cst_114 = arith.constant 0.797884583 : f32
    %361 = vector.broadcast %cst_114 : f32 to vector<16x64xf32>
    %362 = arith.mulf %361, %360 : vector<16x64xf32>
    %363 = math.tanh %362 : vector<16x64xf32>
    %cst_115 = arith.constant 1.000000e+00 : f32
    %364 = vector.broadcast %cst_115 : f32 to vector<16x64xf32>
    %365 = arith.addf %364, %363 : vector<16x64xf32>
    %366 = arith.mulf %355, %365 : vector<16x64xf32>
    %367 = arith.truncf %366 : vector<16x64xf32> to vector<16x64xbf16>
    %368 = arith.index_cast %c1_i32 : i32 to index
    %c0_116 = arith.constant 0 : index
    %c0_117 = arith.constant 0 : index
    %369 = vector.load %arg7[%368, %c0_116, %c0_117] : memref<2x64x32xbf16, #tpu.memory_space<vmem>>, vector<1x64x32xbf16>
    %370 = vector.shape_cast %369 : vector<1x64x32xbf16> to vector<64x32xbf16>
    %cst_118 = arith.constant dense<0.000000e+00> : vector<16x32xf32>
    %371 = tpu.matmul %367, %370, %cst_118 {dimension_numbers = #tpu.dot_dimension_numbers<[1], [0], [0], [1], [0, 0, 1, 1], [], []>} : vector<16x64xbf16>, vector<64x32xbf16>, vector<16x32xf32> -> vector<16x32xf32>
    %372 = vector.extract_strided_slice %205 {offsets = [1, 0], sizes = [1, 32], strides = [1, 1]} : vector<6x32xf32> to vector<1x32xf32>
    %373 = vector.broadcast %372 : vector<1x32xf32> to vector<16x32xf32>
    %374 = arith.addf %371, %373 : vector<16x32xf32>
    %375 = arith.addf %343, %374 : vector<16x32xf32>
    %376 = vector.extract_strided_slice %205 {offsets = [4, 0], sizes = [1, 32], strides = [1, 1]} : vector<6x32xf32> to vector<1x32xf32>
    %377 = vector.extract_strided_slice %205 {offsets = [5, 0], sizes = [1, 32], strides = [1, 1]} : vector<6x32xf32> to vector<1x32xf32>
    %cst_119 = arith.constant dense<0.000000e+00> : vector<16xf32>
    %378 = vector.multi_reduction <add>, %375, %cst_119 [1] : vector<16x32xf32> to vector<16xf32>
    %379 = vector.shape_cast %378 : vector<16xf32> to vector<16x1xf32>
    %cst_120 = arith.constant 3.200000e+01 : f32
    %380 = vector.broadcast %cst_120 : f32 to vector<16x1xf32>
    %381 = arith.divf %379, %380 : vector<16x1xf32>
    %382 = vector.broadcast %381 : vector<16x1xf32> to vector<16x32xf32>
    %383 = arith.subf %375, %382 : vector<16x32xf32>
    %384 = arith.mulf %383, %383 : vector<16x32xf32>
    %cst_121 = arith.constant dense<0.000000e+00> : vector<16xf32>
    %385 = vector.multi_reduction <add>, %384, %cst_121 [1] : vector<16x32xf32> to vector<16xf32>
    %386 = vector.shape_cast %385 : vector<16xf32> to vector<16x1xf32>
    %cst_122 = arith.constant 3.200000e+01 : f32
    %387 = vector.broadcast %cst_122 : f32 to vector<16x1xf32>
    %388 = arith.divf %386, %387 : vector<16x1xf32>
    %389 = vector.broadcast %381 : vector<16x1xf32> to vector<16x32xf32>
    %390 = arith.subf %375, %389 : vector<16x32xf32>
    %cst_123 = arith.constant 9.99999996E-13 : f32
    %391 = vector.broadcast %cst_123 : f32 to vector<16x1xf32>
    %392 = arith.addf %388, %391 : vector<16x1xf32>
    %393 = math.rsqrt %392 : vector<16x1xf32>
    %394 = vector.broadcast %393 : vector<16x1xf32> to vector<16x32xf32>
    %395 = arith.mulf %390, %394 : vector<16x32xf32>
    %396 = vector.broadcast %376 : vector<1x32xf32> to vector<16x32xf32>
    %397 = arith.mulf %395, %396 : vector<16x32xf32>
    %398 = vector.broadcast %377 : vector<1x32xf32> to vector<16x32xf32>
    %399 = arith.addf %397, %398 : vector<16x32xf32>
    %c0_124 = arith.constant 0 : index
    %c0_125 = arith.constant 0 : index
    %400 = vector.load %arg10[%c0_124, %c0_125] : memref<16x32xf32, #tpu.memory_space<vmem>>, vector<16x32xf32>
    tpu.vector_store %arg10[%c0_124, %c0_125], %399 {strides = array<i32>} : memref<16x32xf32, #tpu.memory_space<vmem>>, vector<16x32xf32>,
    %c2_i32 = arith.constant 2 : i32
    %c0_126 = arith.constant 0 : index
    %c0_127 = arith.constant 0 : index
    %401 = vector.load %arg10[%c0_126, %c0_127] : memref<16x32xf32, #tpu.memory_space<vmem>>, vector<16x32xf32>
    %402 = vector.extract_strided_slice %401 {offsets = [0, 0], sizes = [1, 32], strides = [1, 1]} : vector<16x32xf32> to vector<1x32xf32>
    %c0_128 = arith.constant 0 : index
    %c0_129 = arith.constant 0 : index
    %403 = vector.load %arg9[%c0_128, %c0_129] : memref<2x32xf32, #tpu.memory_space<vmem>>, vector<1x32xf32>
    tpu.vector_store %arg9[%c0_128, %c0_129], %402 {strides = array<i32>} : memref<2x32xf32, #tpu.memory_space<vmem>>, vector<1x32xf32>,
    %404 = vector.extract_strided_slice %401 {offsets = [8, 0], sizes = [1, 32], strides = [1, 1]} : vector<16x32xf32> to vector<1x32xf32>
    %c1 = arith.constant 1 : index
    %c0_130 = arith.constant 0 : index
    %405 = vector.load %arg9[%c1, %c0_130] : memref<2x32xf32, #tpu.memory_space<vmem>>, vector<1x32xf32>
    tpu.vector_store %arg9[%c1, %c0_130], %404 {strides = array<i32>} : memref<2x32xf32, #tpu.memory_space<vmem>>, vector<1x32xf32>,
    return
  }
}

</mosaic_0001>

<bundles_post_ra>
// kernel: tpu_custom_call.1
= control target key start
LH: loop header
LB: loop body
LE: loop exit
PB: predicated region body
PF: predicated region fallthrough
CT: control target
= control target key end

     0   :  { %14 = vsyncpa [#allocation4], 0  ;;  %s3757_s0 = inlined_call_operand.hbm [shape: f32[16,32], index: 0, kind: input, shape index: {}]   ;;  %s3758_s1 = inlined_call_operand.hbm [shape: f32[2,8], index: 1, kind: input, shape index: {}]   ;;  %s3759_s2 = inlined_call_operand.hbm [shape: bf16[2,32,96], index: 2, kind: input, shape index: {}]   ;;  %s3760_s3 = inlined_call_operand.hbm [shape: f32[2,1,96], index: 3, kind: input, shape index: {}]   ;;  %s3761_s4 = inlined_call_operand.hbm [shape: bf16[2,32,32], index: 4, kind: input, shape index: {}]   ;;  %s3762_s5 = inlined_call_operand.hbm [shape: bf16[2,32,64], index: 5, kind: input, shape index: {}]   ;;  %s3763_s6 = inlined_call_operand.hbm [shape: f32[2,1,64], index: 6, kind: input, shape index: {}]   ;;  %s3764_s7 = inlined_call_operand.hbm [shape: bf16[2,64,32], index: 7, kind: input, shape index: {}]   ;;  %s3765_s8 = inlined_call_operand.hbm [shape: f32[2,6,32], index: 8, kind: input, shape index: {}]   ;;  %s3766_s9 = inlined_call_operand.hbm [shape: f32[2,32], index: 9, kind: output, shape index: {}]  }
   0x1   :  { %15 = vsyncpa [#allocation7], 0 }
   0x2   :  { %16 = vsyncpa [#allocation10], 0 }
   0x3   :  { %17 = vsyncpa [#allocation13], 0 }
   0x4   :  { %18 = vsyncpa [#allocation16], 0 }
   0x5   :  { %19 = vsyncpa [#allocation5], 0  ;;  %s3217_s30 = smov [#allocation6]   ;;  %s3218_s11 = smov [#allocation9]  }
   0x6   :  { %s38_s10 = sshll.u32 %s3217_s30, 4  ;;  %s59_s12 = sshll.u32 %s3218_s11, 4  ;;  %s39_s10 = int_to_ptr.vmem [resolvable:$true] %s38_s10  ;;  %s3289_s12 = int_to_ptr.vmem [resolvable:$true] %s59_s12 }
   0x7   :  { %s2985_s15 = scalar_lea.hbm %s3758_s1, 32 }
   0x8   :  { %p2986_p0 = scmp.ne.s32.totalorder %s3758_s1, %s2985_s15  ;;  %p2989_p1 = scmp.lt.u32.totalorder %s2985_s15, %s3758_s1 }
   0xa   :  { %p2991_p2 = pnand %p2989_p1, %p2986_p0 }
   0xc   :  { %2994 = shalt.err (!%p2991_p2)
}
   0xd   :  { %s2995_s20 = scalar_lea.vmem %s39_s10, 32  ;;  %p3000_p4 = scmp.lt.s32.totalorder %s39_s10, %s39_s10 }
   0xe   :  { %p2996_p3 = scmp.ne.s32.totalorder %s39_s10, %s2995_s20  ;;  %p3001_p5 = scmp.lt.s32.totalorder %s2995_s20, %s2995_s20 }
  0x10   :  { %p3002_p6 = por %p3001_p5, %p3000_p4 }
  0x12   :  { %p3003_p7 = pnand %p3002_p6, %p2996_p3 }
  0x14   :  { %3006 = shalt.err (!%p3003_p7)
}
  0x15   :  { %41 = dma.hbm_to_vmem [thread:$0]  %s3758_s1, 32, %s39_s10, [#allocation7]  }
  0x16   :  { %s3007_s25 = scalar_lea.hbm %s3760_s3, 32 }
  0x17   :  { %p3008_p8 = scmp.ne.s32.totalorder %s3760_s3, %s3007_s25  ;;  %p3011_p9 = scmp.lt.u32.totalorder %s3007_s25, %s3760_s3 }
  0x19   :  { %p3013_p10 = pnand %p3011_p9, %p3008_p8 }
  0x1b   :  { %3016 = shalt.err (!%p3013_p10)
}
  0x1c   :  { %s3017_s30 = scalar_lea.vmem %s3289_s12, 32  ;;  %p3022_p12 = scmp.lt.s32.totalorder %s3289_s12, %s3289_s12 }
  0x1d   :  { %p3018_p11 = scmp.ne.s32.totalorder %s3289_s12, %s3017_s30  ;;  %p3023_p13 = scmp.lt.s32.totalorder %s3017_s30, %s3017_s30 }
  0x1f   :  { %p3024_p0 = por %p3023_p13, %p3022_p12 }
  0x21   :  { %p3025_p1 = pnand %p3024_p0, %p3018_p11 }
  0x23   :  { %3028 = shalt.err (!%p3025_p1)
}
  0x24   :  { %s3219_s1 = smov 16   ;;  %s3220_s10 = smov 1  }
  0x25   :  { %65 = dma.hbm_to_vmem [thread:$0]  %s3760_s3, 32, %s3289_s12, [#allocation10], %s3219_s1, %s3219_s1, %s3220_s10  }
  0x26   :  { %s3221_s14 = smov [#allocation12]   ;;  %s3222_s16 = smov [#allocation15]  }
  0x27   :  { %s83_s15 = sshll.u32 %s3221_s14, 4  ;;  %s107_s17 = sshll.u32 %s3222_s16, 4  ;;  %s84_s15 = int_to_ptr.vmem [resolvable:$true] %s83_s15  ;;  %s3323_s17 = int_to_ptr.vmem [resolvable:$true] %s107_s17 }
  0x28   :  { %s3029_s20 = scalar_lea.hbm %s3762_s5, 512 }
  0x29   :  { %p3030_p2 = scmp.ne.s32.totalorder %s3762_s5, %s3029_s20  ;;  %p3033_p3 = scmp.lt.u32.totalorder %s3029_s20, %s3762_s5 }
  0x2b   :  { %p3035_p4 = pnand %p3033_p3, %p3030_p2 }
  0x2d   :  { %3038 = shalt.err (!%p3035_p4)
}
  0x2e   :  { %s3039_s3 = scalar_lea.vmem %s84_s15, 512  ;;  %p3044_p6 = scmp.lt.s32.totalorder %s84_s15, %s84_s15 }
  0x2f   :  { %p3040_p5 = scmp.ne.s32.totalorder %s84_s15, %s3039_s3  ;;  %p3045_p7 = scmp.lt.s32.totalorder %s3039_s3, %s3039_s3 }
  0x31   :  { %p3046_p8 = por %p3045_p7, %p3044_p6 }
  0x33   :  { %p3047_p9 = pnand %p3046_p8, %p3040_p5 }
  0x35   :  { %3050 = shalt.err (!%p3047_p9)
}
  0x36   :  { %s3223_s12 = smov 64   ;;  %s3224_s25 = smov 4  }
  0x37   :  { %89 = dma.hbm_to_vmem [thread:$0]  %s3762_s5, 512, %s84_s15, [#allocation13], %s3223_s12, %s3223_s12, %s3224_s25  }
  0x38   :  { %s3051_s30 = scalar_lea.hbm %s3764_s7, 1024 }
  0x39   :  { %p3052_p10 = scmp.ne.s32.totalorder %s3764_s7, %s3051_s30  ;;  %p3055_p11 = scmp.lt.u32.totalorder %s3051_s30, %s3764_s7 }
  0x3b   :  { %p3057_p12 = pnand %p3055_p11, %p3052_p10 }
  0x3d   :  { %3060 = shalt.err (!%p3057_p12)
}
  0x3e   :  { %s3061_s18 = scalar_lea.vmem %s3323_s17, 1024  ;;  %p3066_p0 = scmp.lt.s32.totalorder %s3323_s17, %s3323_s17 }
  0x3f   :  { %p3062_p13 = scmp.ne.s32.totalorder %s3323_s17, %s3061_s18  ;;  %p3067_p1 = scmp.lt.s32.totalorder %s3061_s18, %s3061_s18 }
  0x41   :  { %p3068_p2 = por %p3067_p1, %p3066_p0 }
  0x43   :  { %p3069_p3 = pnand %p3068_p2, %p3062_p13 }
  0x45   :  { %3072 = shalt.err (!%p3069_p3)
}
  0x46   :  { %113 = dma.hbm_to_vmem [thread:$0]  %s3764_s7, 1024, %s3323_s17, [#allocation16], %s3223_s12, %s3223_s12, %s3224_s25  }
  0x47   :  { %s3225_s19 = smov [#allocation3]   ;;  %s3073_s23 = scalar_lea.hbm %s3757_s0, 256 }
  0x48   :  { %s25_s20 = sshll.u32 %s3225_s19, 4  ;;  %p3074_p4 = scmp.ne.s32.totalorder %s3757_s0, %s3073_s23  ;;  %s26_s20 = int_to_ptr.vmem [resolvable:$true] %s25_s20 }
  0x49   :  { %p3077_p5 = scmp.lt.u32.totalorder %s3073_s23, %s3757_s0 }
  0x4b   :  { %p3079_p6 = pnand %p3077_p5, %p3074_p4 }
  0x4d   :  { %3082 = shalt.err (!%p3079_p6)
}
  0x4e   :  { %s3083_s28 = scalar_lea.vmem %s26_s20, 256  ;;  %p3088_p8 = scmp.lt.s32.totalorder %s26_s20, %s26_s20 }
  0x4f   :  { %p3084_p7 = scmp.ne.s32.totalorder %s26_s20, %s3083_s28  ;;  %p3089_p9 = scmp.lt.s32.totalorder %s3083_s28, %s3083_s28 }
  0x51   :  { %p3090_p10 = por %p3089_p9, %p3088_p8 }
  0x53   :  { %p3091_p11 = pnand %p3090_p10, %p3084_p7 }
  0x55   :  { %3094 = shalt.err (!%p3091_p11)
}
  0x56   :  { %s3226_s7 = smov 128   ;;  %s3227_s17 = smov 8  }
  0x57   :  { %31 = dma.hbm_to_vmem [thread:$0]  %s3757_s0, 256, %s26_s20, [#allocation4], %s3226_s7, %s3226_s7, %s3227_s17  }
  0x58   :  { %s3228_s11 = smov [#allocation8]   ;;  %s3229_s14 = smov [#allocation11]  }
  0x59   :  { %s47_s13 = sshll.u32 %s3228_s11, 4  ;;  %s71_s16 = sshll.u32 %s3229_s14, 4  ;;  %s48_s13 = int_to_ptr.vmem [resolvable:$true] %s47_s13  ;;  %s72_s16 = int_to_ptr.vmem [resolvable:$true] %s71_s16 }
  0x5a   :  { %s3095_s15 = scalar_lea.hbm %s3759_s2, 512 }
  0x5b   :  { %p3096_p12 = scmp.ne.s32.totalorder %s3759_s2, %s3095_s15  ;;  %p3099_p13 = scmp.lt.u32.totalorder %s3095_s15, %s3759_s2 }
  0x5d   :  { %p3101_p0 = pnand %p3099_p13, %p3096_p12 }
  0x5f   :  { %3104 = shalt.err (!%p3101_p0)
}
  0x60   :  { %s3105_s0 = scalar_lea.vmem %s48_s13, 512  ;;  %p3110_p2 = scmp.lt.s32.totalorder %s48_s13, %s48_s13 }
  0x61   :  { %p3106_p1 = scmp.ne.s32.totalorder %s48_s13, %s3105_s0  ;;  %p3111_p3 = scmp.lt.s32.totalorder %s3105_s0, %s3105_s0 }
  0x63   :  { %p3112_p4 = por %p3111_p3, %p3110_p2 }
  0x65   :  { %p3113_p5 = pnand %p3112_p4, %p3106_p1 }
  0x67   :  { %3116 = shalt.err (!%p3113_p5)
}
  0x68   :  { %53 = dma.hbm_to_vmem [thread:$0]  %s3759_s2, 512, %s48_s13, [#allocation7], %s3223_s12, %s3223_s12, %s3224_s25  }
  0x69   :  { %s3117_s27 = scalar_lea.hbm %s3761_s4, 512 }
  0x6a   :  { %p3118_p6 = scmp.ne.s32.totalorder %s3761_s4, %s3117_s27  ;;  %p3121_p7 = scmp.lt.u32.totalorder %s3117_s27, %s3761_s4 }
  0x6c   :  { %p3123_p8 = pnand %p3121_p7, %p3118_p6 }
  0x6e   :  { %3126 = shalt.err (!%p3123_p8)
}
  0x6f   :  { %s3127_s14 = scalar_lea.vmem %s72_s16, 512  ;;  %p3132_p10 = scmp.lt.s32.totalorder %s72_s16, %s72_s16 }
  0x70   :  { %p3128_p9 = scmp.ne.s32.totalorder %s72_s16, %s3127_s14  ;;  %p3133_p11 = scmp.lt.s32.totalorder %s3127_s14, %s3127_s14 }
  0x72   :  { %p3134_p12 = por %p3133_p11, %p3132_p10 }
  0x74   :  { %p3135_p13 = pnand %p3134_p12, %p3128_p9 }
  0x76   :  { %3138 = shalt.err (!%p3135_p13)
}
  0x77   :  { %77 = dma.hbm_to_vmem [thread:$0]  %s3761_s4, 512, %s72_s16, [#allocation10], %s3223_s12, %s3223_s12, %s3224_s25  }
  0x78   :  { %s3230_s18 = smov [#allocation14]   ;;  %s3231_s15 = smov [#allocation17]  }
  0x79   :  { %s95_s5 = sshll.u32 %s3230_s18, 4  ;;  %s119_s19 = sshll.u32 %s3231_s15, 4  ;;  %s96_s5 = int_to_ptr.vmem [resolvable:$true] %s95_s5  ;;  %s120_s19 = int_to_ptr.vmem [resolvable:$true] %s119_s19 }
  0x7a   :  { %s3139_s23 = scalar_lea.hbm %s3763_s6, 32 }
  0x7b   :  { %p3140_p0 = scmp.ne.s32.totalorder %s3763_s6, %s3139_s23  ;;  %p3143_p1 = scmp.lt.u32.totalorder %s3139_s23, %s3763_s6 }
  0x7d   :  { %p3145_p2 = pnand %p3143_p1, %p3140_p0 }
  0x7f   :  { %3148 = shalt.err (!%p3145_p2)
}
  0x80   :  { %s3149_s4 = scalar_lea.vmem %s96_s5, 32  ;;  %p3154_p4 = scmp.lt.s32.totalorder %s96_s5, %s96_s5 }
  0x81   :  { %p3150_p3 = scmp.ne.s32.totalorder %s96_s5, %s3149_s4  ;;  %p3155_p5 = scmp.lt.s32.totalorder %s3149_s4, %s3149_s4 }
  0x83   :  { %p3156_p6 = por %p3155_p5, %p3154_p4 }
  0x85   :  { %p3157_p7 = pnand %p3156_p6, %p3150_p3 }
  0x87   :  { %3160 = shalt.err (!%p3157_p7)
}
  0x88   :  { %101 = dma.hbm_to_vmem [thread:$0]  %s3763_s6, 32, %s96_s5, [#allocation13], %s3219_s1, %s3219_s1, %s3220_s10  }
  0x89   :  { %s3161_s28 = scalar_lea.hbm %s3765_s8, 256 }
  0x8a   :  { %p3162_p8 = scmp.ne.s32.totalorder %s3765_s8, %s3161_s28  ;;  %p3165_p9 = scmp.lt.u32.totalorder %s3161_s28, %s3765_s8 }
  0x8c   :  { %p3167_p10 = pnand %p3165_p9, %p3162_p8 }
  0x8e   :  { %3170 = shalt.err (!%p3167_p10)
}
  0x8f   :  { %s3171_s2 = scalar_lea.vmem %s120_s19, 256  ;;  %p3176_p12 = scmp.lt.s32.totalorder %s120_s19, %s120_s19 }
  0x90   :  { %p3172_p11 = scmp.ne.s32.totalorder %s120_s19, %s3171_s2  ;;  %p3177_p13 = scmp.lt.s32.totalorder %s3171_s2, %s3171_s2 }
  0x92   :  { %p3178_p0 = por %p3177_p13, %p3176_p12 }
  0x94   :  { %p3179_p1 = pnand %p3178_p0, %p3172_p11 }
  0x96   :  { %3182 = shalt.err (!%p3179_p1)
}
  0x97   :  { %125 = dma.hbm_to_vmem [thread:$0]  %s3765_s8, 256, %s120_s19, [#allocation16], %s3226_s7, %s3226_s7, %s3227_s17  }
  0x98   :  { %3205 = dma.done.wait [#allocation4], 256  }
  0x99   :  { %3206 = vsyncadd [#allocation4], 4294967040 }
  0x9a   :  { %3207 = dma.done.wait [#allocation7], 544  }
  0x9b   :  { %3208 = vsyncadd [#allocation7], 4294966752 }
  0x9c   :  { %3209 = dma.done.wait [#allocation10], 544  }
  0x9d   :  { %3210 = vsyncadd [#allocation10], 4294966752 }
  0x9e   :  { %3211 = dma.done.wait [#allocation13], 544  }
  0x9f   :  { %3212 = vsyncadd [#allocation13], 4294966752 }
  0xa0   :  { %3213 = dma.done.wait [#allocation16], 1280  }
  0xa1   :  { %3214 = vsyncadd [#allocation16], 4294966016  ;;  %v3232_v0 = vmov 0.0   ;;  %vm3233_vm0 = vmmov 0   ;;  %v2909_v1 = vld [vmem:[#allocation8] sm:$0xff]   ;;  %vm156_vm1 = vcmask 261120   ;;  %v314_v17 = vlaneseq }
  0xa2   :  { %2703 = vmatprep.subr.bf16.mxu0 %v3232_v0  ;;  %2707 = vmatprep.mubr.msk.bf16.mxu0 %vm3233_vm0, %v3232_v0  ;;  %v2910_v2 = vld [vmem:[#allocation8 + $0x8] sm:$0xff]   ;;  %v155_v4 = vld [vmem:[#allocation3 + $0x8] sm:$0xff]  ;;  %v2571_v8 = vld [vmem:[#allocation9] ss:$0 sm:$0xff]  ;;  %s3234_s8 = smov 96   ;;  %s3235_s10 = smov 80  }
  0xa3   :  { %2711 = vmatprep.subr.mxu1 %v3232_v0  ;;  %2713 = vmatprep.mubr.msk.f32.mxu1 %vm3233_vm0, %v3232_v0  ;;  %v154_v3 = vld [vmem:[#allocation3] sm:$0xff]  ;;  %158 = vst.msk [vmem:[#allocation2 + $0x8] sm:$0xff] %vm156_vm1, %v155_v4  ;;  %vm238_vm2 = vcmask 130048   ;;  %v3471_v18 = vshrl.u32 %v314_v17, 7  ;;  %v3476_v20 = vld [vmem:[#allocation6] sm:$0x3] }
  0xa4   :  { %2704 = vmatpush3.bf16.msra.mxu0 %v2909_v1  ;;  %157 = vst.msk [vmem:[#allocation2] sm:$0xff] %vm156_vm1, %v154_v3  ;;  %vm319_vm3 = vcmask 64512   ;;  %s3236_s7 = smov 112   ;;  %v3495_v37 = vld [vmem:[#allocation11] sm:$0xff]   ;;  %s3237_s17 = smov 48   ;;  %v2912_v58 = vld [vmem:[#allocation11 + $0x8] sm:$0xff]  }
  0xa5   :  { %2705 = vmatprep.subr.bf16.mxu0 %v3232_v0  ;;  %v3474_v19 = vsub.s32 0, %v3471_v18  ;;  %vm1269_vm4 = vcmask 523264   ;;  %vm2549_vm5 = vcmask 253952  }
  0xa7   :  { %v3480_v21 = vrot.slane %v3476_v20, %v3474_v19 }
  0xa8   :  { %2706 = vmatpush3.bf16.msra.mxu0 %v2910_v2 }
  0xa9   :  { %2737 = vmatprep.subr.bf16.mxu0 %v3232_v0 }
  0xaa   :  { %v3447_v6 = vld [vmem:[#allocation2 + $0x8] sm:$0xff] }
  0xab   :  { %v3445_v5 = vld [vmem:[#allocation2] sm:$0xff] }
  0xac   :  { %v163_v7 = vpack.c.bf16 %v3447_v6, %v3445_v5 }
  0xae   :  { %2708 = vmatmul.mubr.msk.bf16.vlgmr.msra.gmra.mrb[0].mxu0 %vm156_vm1, %v163_v7 }
  0xaf   :  { %2739 = vmatprep.mubr.msk.bf16.mxu0 %vm3233_vm0, %v3232_v0  ;;  %2738 = vmatpush3.bf16.msra.mxu0 %v3495_v37 }
  0xb0   :  { %2748 = vmatprep.subr.mxu0 %v3232_v0 }
 0x181   :  { %v224_v9 = vpop.f32.mrb[0].mxu0 }
 0x182   :  { %v3454_v10 = vadd.f32 %v2571_v8, %v224_v9  ;;  %v2709_v11 = vpop.f32.mrb[1].mxu0 }
 0x183   :  { %v227_v12 = vpop.f32.mrb[2].mxu0 }
 0x184   :  { %v3456_v13 = vadd.f32 %v2571_v8, %v227_v12  ;;  %331 = vrot.lane.b32.xlu1 %v3454_v10, %s3223_s12  ;;  %236 = vrot.lane.b32.xlu0 %v3454_v10, %s3234_s8  ;;  %v2710_v14 = vpop.f32.mrb[3].mxu0 }
 0x188   :  { %410 = vrot.lane.b32.xlu1 %v3454_v10, %s3235_s10 }
 0x1f6   :  { %v237_v15 = vpop.permute.xlu0 %236  ;;  %v332_v16 = vpop.permute.xlu1 %331 }
 0x1f7   :  { %2712 = vmatpush3.xpose.msk.msra.mxu1 %vm238_vm2, %v237_v15 }
 0x1f8   :  { %2716 = vmatprep.subr.mxu1 %v3232_v0 }
 0x1fa   :  { %2714 = vmatmul.mubr.msk.f32.vlgmr.msra.gmra.mrb[0].mxu1 %vm238_vm2, %v3454_v10  ;;  %v411_v32 = vpop.permute.xlu1 %410 }
 0x1fb   :  { %2717 = vmatpush3.msra.mxu1 %v332_v16  ;;  %2718 = vmatprep.mubr.msk.f32.mxu1 %vm3233_vm0, %v3232_v0 }
 0x1fc   :  { %2721 = vmatprep.subr.mxu1 %v3232_v0 }
 0x2cd   :  { %v309_v22 = vpop.f32.mrb[0].mxu1 }
 0x2ce   :  { %v313_v23 = vmul.f32 0.25, %v309_v22  ;;  %v2715_v24 = vpop.f32.mrb[1].mxu1 }
 0x2d0   :  { %v318_v25 = vadd.f32 %v3480_v21, %v313_v23 }
 0x2d2   :  { %v320_v26 = vsel %vm319_vm3, %v318_v25, -inf }
 0x2d3   :  { %321 = vmax.xlane.f32.xlu0 %v320_v26 }
 0x360   :  { %v322_v27 = vpop.xlane.xlu0 %321 }
 0x361   :  { %v323_v28 = vsub.f32 %v318_v25, %v322_v27 }
 0x363   :  { %v324_v29 = vmul.f32 1.442695, %v323_v28 }
 0x365   :  { %2929 = vpow2.f32 %v324_v29 }
 0x36f   :  { %v2930_v30 = vpop.eup %2929 }
 0x370   :  { %v326_v31 = vsel %vm319_vm3, %v2930_v30, 0.0 }
 0x371   :  { %327 = vadd.xlane.f32.xlu1 %v326_v31 }
 0x382   :  { %408 = vrot.lane.b32.xlu1 %v3454_v10, %s3236_s7 }
 0x3fe   :  { %v328_v33 = vpop.xlane.xlu1 %327 }
 0x3ff   :  { %2931 = vrcp.f32 %v328_v33 }
 0x402   :  { %v409_v36 = vpop.permute.xlu1 %408 }
 0x409   :  { %v2932_v34 = vpop.eup %2931 }
 0x40a   :  { %v330_v35 = vmul.f32 %v2932_v34, %v2930_v30 }
 0x40c   :  { %2719 = vmatmul.mubr.msk.f32.vlgmr.msra.gmra.mrb[2].mxu1 %vm319_vm3, %v330_v35 }
 0x40d   :  { %2722 = vmatpush3.xpose.msk.msra.mxu1 %vm238_vm2, %v411_v32  ;;  %2723 = vmatprep.mubr.msk.f32.mxu1 %vm3233_vm0, %v3232_v0 }
 0x40e   :  { %2726 = vmatprep.subr.mxu1 %v3232_v0 }
 0x410   :  { %2724 = vmatmul.mubr.msk.f32.vlgmr.msra.gmra.mrb[4].mxu1 %vm238_vm2, %v409_v36  ;;  %v3550_v36 = vld [vmem:[#allocation17] sm:$0x3f] }
 0x411   :  { %2728 = vmatprep.mubr.msk.f32.mxu1 %vm3233_vm0, %v3232_v0 }
 0x4df   :  { %v403_v38 = vpop.f32.mrb[2].mxu1 }
 0x4e0   :  { %v407_v39 = vpack.c.bf16 %v403_v38, %v403_v38  ;;  %v2720_v40 = vpop.f32.mrb[3].mxu1  ;;  %v1102_v38 = vrot.slane %v3550_v36, %v3474_v19 }
 0x4e2   :  { %2740 = vmatmul.mubr.msk.bf16.vlgmr.msra.gmra.mrb[4].mxu0 %vm238_vm2, %v407_v39 }
 0x4e3   :  { %v482_v41 = vpop.f32.mrb[4].mxu1  ;;  %2750 = vmatprep.mubr.msk.f32.mxu0 %vm3233_vm0, %v3232_v0 }
 0x4e4   :  { %v486_v42 = vmul.f32 0.25, %v482_v41  ;;  %v2725_v43 = vpop.f32.mrb[5].mxu1 }
 0x4e6   :  { %v487_v44 = vadd.f32 %v486_v42, %v3480_v21 }
 0x4e8   :  { %v488_v45 = vsel %vm319_vm3, %v487_v44, -inf }
 0x4e9   :  { %489 = vmax.xlane.f32.xlu1 %v488_v45 }
 0x4fa   :  { %845 = vrot.lane.b32.xlu1 %v3456_v13, %s3236_s7 }
 0x576   :  { %v490_v46 = vpop.xlane.xlu1 %489 }
 0x577   :  { %v491_v47 = vsub.f32 %v487_v44, %v490_v46 }
 0x579   :  { %v492_v48 = vmul.f32 1.442695, %v491_v47 }
 0x57a   :  { %v846_v2 = vpop.permute.xlu1 %845 }
 0x57b   :  { %2933 = vpow2.f32 %v492_v48 }
 0x585   :  { %v2934_v49 = vpop.eup %2933 }
 0x586   :  { %v494_v50 = vsel %vm319_vm3, %v2934_v49, 0.0 }
 0x587   :  { %495 = vadd.xlane.f32.xlu0 %v494_v50 }
 0x59d   :  { %499 = vrot.lane.b32.xlu0 %v3454_v10, %s3237_s17  ;;  %v3534_v10 = vsub.s32 1, %v3471_v18 }
 0x59f   :  { %v3538_v11 = vrot.slane %v3476_v20, %v3534_v10 }
 0x5a1   :  { %675 = vrot.lane.b32.xlu0 %v3456_v13, %s3234_s8 }
 0x5a5   :  { %847 = vrot.lane.b32.xlu0 %v3456_v13, %s3235_s10 }
 0x5b5   :  { %v668_v51 = vpop.f32.mrb[4].mxu0 }
 0x5b6   :  { %v2741_v52 = vpop.f32.mrb[5].mxu0 }
 0x5b7   :  { %v671_v53 = vpop.f32.mrb[6].mxu0 }
 0x5b8   :  { %v2742_v54 = vpop.f32.mrb[7].mxu0 }
 0x614   :  { %v496_v55 = vpop.xlane.xlu0 %495 }
 0x615   :  { %2935 = vrcp.f32 %v496_v55 }
 0x618   :  { %v500_v56 = vpop.permute.xlu0 %499 }
 0x619   :  { %2727 = vmatpush3.msra.mxu1 %v500_v56 }
 0x61a   :  { %2731 = vmatprep.subr.bf16.mxu1 %v3232_v0 }
 0x61c   :  { %v676_v63 = vpop.permute.xlu0 %675 }
 0x61f   :  { %v2936_v57 = vpop.eup %2935 }
 0x620   :  { %v498_v59 = vmul.f32 %v2936_v57, %v2934_v49  ;;  %v848_v1 = vpop.permute.xlu0 %847 }
 0x622   :  { %2729 = vmatmul.mubr.msk.f32.vlgmr.msra.gmra.mrb[6].mxu1 %vm319_vm3, %v498_v59 }
 0x623   :  { %2732 = vmatpush3.bf16.msra.mxu1 %v2912_v58  ;;  %2733 = vmatprep.mubr.msk.bf16.mxu1 %vm3233_vm0, %v3232_v0 }
 0x624   :  { %2743 = vmatprep.subr.mxu1 %v3232_v0 }
 0x6f5   :  { %v571_v60 = vpop.f32.mrb[6].mxu1 }
 0x6f6   :  { %v575_v61 = vpack.c.bf16 %v571_v60, %v571_v60  ;;  %v2730_v62 = vpop.f32.mrb[7].mxu1 }
 0x6f8   :  { %2734 = vmatmul.mubr.msk.bf16.vlgmr.msra.gmra.mrb[8].mxu1 %vm238_vm2, %v575_v61 }
 0x6f9   :  { %2744 = vmatpush3.xpose.msk.msra.mxu1 %vm238_vm2, %v676_v63  ;;  %2745 = vmatprep.mubr.msk.f32.mxu1 %vm3233_vm0, %v3232_v0 }
 0x6fa   :  { %2753 = vmatprep.subr.mxu1 %v3232_v0 }
 0x700   :  { %2746 = vmatmul.mubr.msk.f32.vlgmr.msra.gmra.mrb[12].mxu1 %vm238_vm2, %v3456_v13 }
 0x701   :  { %2754 = vmatpush3.xpose.msk.msra.mxu1 %vm238_vm2, %v848_v1  ;;  %2755 = vmatprep.mubr.msk.f32.mxu1 %vm3233_vm0, %v3232_v0 }
 0x702   :  { %2763 = vmatprep.subr.bf16.mxu1 %v3232_v0 }
 0x704   :  { %2756 = vmatmul.mubr.msk.f32.vlgmr.msra.gmra.mrb[14].mxu1 %vm238_vm2, %v846_v2 }
 0x705   :  { %2764 = vmatpush3.bf16.msra.mxu1 %v2912_v58  ;;  %2765 = vmatprep.mubr.msk.bf16.mxu1 %vm3233_vm0, %v3232_v0 }
 0x706   :  { %2775 = vmatprep.subr.bf16.mxu1 %v3232_v0 }
 0x7cb   :  { %v619_v3 = vpop.f32.mrb[8].mxu1 }
 0x7cc   :  { %v669_v4 = vadd.f32 %v668_v51, %v619_v3  ;;  %v2735_v7 = vpop.f32.mrb[9].mxu1 }
 0x7cd   :  { %v622_v8 = vpop.f32.mrb[10].mxu1 }
 0x7ce   :  { %v2736_v9 = vpop.f32.mrb[11].mxu1  ;;  %v1103_v39 = vadd.f32 %v1102_v38, %v669_v4 }
 0x7d0   :  { %v1105_v40 = vadd.f32 %v1103_v39, %v3445_v5 }
 0x7d2   :  { %v1107_v41 = vsel %vm156_vm1, %v1105_v40, 0.0 }
 0x7d3   :  { %v747_v12 = vpop.f32.mrb[12].mxu1 }
 0x7d4   :  { %v751_v14 = vmul.f32 0.25, %v747_v12  ;;  %v2747_v15 = vpop.f32.mrb[13].mxu1 }
 0x7d6   :  { %v756_v16 = vadd.f32 %v3538_v11, %v751_v14 }
 0x7d7   :  { %v919_v17 = vpop.f32.mrb[14].mxu1 }
 0x7d8   :  { %v923_v22 = vmul.f32 0.25, %v919_v17  ;;  %v2757_v23 = vpop.f32.mrb[15].mxu1  ;;  %v757_v24 = vsel %vm319_vm3, %v756_v16, -inf  ;;  %v2913_v17 = vld [vmem:[#allocation12] sm:$0xff]  }
 0x7d9   :  { %758 = vmax.xlane.f32.xlu0 %v757_v24 }
 0x7da   :  { %v924_v25 = vadd.f32 %v923_v22, %v3538_v11  ;;  %v2914_v22 = vld [vmem:[#allocation12 + $0x8] sm:$0xff]  }
 0x7dc   :  { %v925_v26 = vsel %vm319_vm3, %v924_v25, -inf }
 0x7dd   :  { %926 = vmax.xlane.f32.xlu1 %v925_v26 }
 0x7ee   :  { %936 = vrot.lane.b32.xlu1 %v3456_v13, %s3237_s17 }
 0x866   :  { %v759_v20 = vpop.xlane.xlu0 %758 }
 0x867   :  { %v760_v27 = vsub.f32 %v756_v16, %v759_v20 }
 0x869   :  { %v761_v28 = vmul.f32 1.442695, %v760_v27  ;;  %v1136_v27 = vsub.s32 2, %v3471_v18 }
 0x86a   :  { %v927_v29 = vpop.xlane.xlu1 %926 }
 0x86b   :  { %2937 = vpow2.f32 %v761_v28  ;;  %v928_v30 = vsub.f32 %v924_v25, %v927_v29  ;;  %v1137_v29 = vrot.slane %v3550_v36, %v1136_v27 }
 0x86d   :  { %v929_v31 = vmul.f32 1.442695, %v928_v30 }
 0x86e   :  { %v937_v46 = vpop.permute.xlu1 %936 }
 0x86f   :  { %2939 = vpow2.f32 %v929_v31  ;;  %v1142_v31 = vsub.s32 3, %v3471_v18 }
 0x875   :  { %v2938_v32 = vpop.eup %2937 }
 0x876   :  { %v763_v33 = vsel %vm319_vm3, %v2938_v32, 0.0 }
 0x877   :  { %764 = vadd.xlane.f32.xlu0 %v763_v33 }
 0x879   :  { %v2940_v34 = vpop.eup %2939 }
 0x87a   :  { %v931_v35 = vsel %vm319_vm3, %v2940_v34, 0.0 }
 0x87b   :  { %932 = vadd.xlane.f32.xlu0 %v931_v35  ;;  %v1143_v35 = vrot.slane %v3550_v36, %v1142_v31 }
 0x891   :  { %768 = vrot.lane.b32.xlu0 %v3456_v13, %s3223_s12 }
 0x8b0   :  { %1108 = vadd.xlane.f32.xlu0 %v1107_v41 }
 0x904   :  { %v765_v42 = vpop.xlane.xlu0 %764 }
 0x905   :  { %2941 = vrcp.f32 %v765_v42  ;;  %v2915_v42 = vld [vmem:[#allocation15] sm:$0xff]  }
 0x908   :  { %v933_v43 = vpop.xlane.xlu0 %932 }
 0x909   :  { %2943 = vrcp.f32 %v933_v43  ;;  %v2916_v43 = vld [vmem:[#allocation15 + $0x8] sm:$0xff]  }
 0x90c   :  { %v769_v44 = vpop.permute.xlu0 %768 }
 0x90d   :  { %2749 = vmatpush3.msra.mxu0 %v769_v44  ;;  %v2917_v44 = vld [vmem:[#allocation15 + $0x10] sm:$0xff]  }
 0x90e   :  { %2758 = vmatprep.subr.mxu0 %v3232_v0 }
 0x90f   :  { %v2942_v13 = vpop.eup %2941 }
 0x910   :  { %v767_v45 = vmul.f32 %v2942_v13, %v2938_v32  ;;  %v2918_v13 = vld [vmem:[#allocation15 + $0x18] sm:$0xff]  }
 0x912   :  { %2751 = vmatmul.mubr.msk.f32.vlgmr.msra.gmra.mrb[8].mxu0 %vm319_vm3, %v767_v45  ;;  %v2593_v45 = vld [vmem:[#allocation14] ss:$0 sm:$0xff] }
 0x913   :  { %v2944_v47 = vpop.eup %2943  ;;  %2759 = vmatpush3.msra.mxu0 %v937_v46  ;;  %2760 = vmatprep.mubr.msk.f32.mxu0 %vm3233_vm0, %v3232_v0 }
 0x914   :  { %v935_v5 = vmul.f32 %v2944_v47, %v2940_v34  ;;  %2769 = vmatprep.subr.bf16.mxu0 %v3232_v0 }
 0x916   :  { %2761 = vmatmul.mubr.msk.f32.vlgmr.msra.gmra.mrb[10].mxu0 %vm319_vm3, %v935_v5 }
 0x917   :  { %2770 = vmatpush3.bf16.msra.mxu0 %v3495_v37  ;;  %2771 = vmatprep.mubr.msk.bf16.mxu0 %vm3233_vm0, %v3232_v0 }
 0x918   :  { %2783 = vmatprep.subr.bf16.mxu0 %v3232_v0 }
 0x93d   :  { %v1109_v48 = vpop.xlane.xlu0 %1108 }
 0x93e   :  { %v1114_v49 = vmul.f32 0.03125, %v1109_v48 }
 0x940   :  { %v1116_v50 = vsub.f32 %v1105_v40, %v1114_v49 }
 0x942   :  { %v1118_v51 = vmul.f32 %v1116_v50, %v1116_v50 }
 0x944   :  { %v1120_v52 = vsel %vm156_vm1, %v1118_v51, 0.0 }
 0x945   :  { %1121 = vadd.xlane.f32.xlu0 %v1120_v52 }
 0x9d2   :  { %v1122_v23 = vpop.xlane.xlu0 %1121 }
 0x9e5   :  { %v840_v53 = vpop.f32.mrb[8].mxu0 }
 0x9e6   :  { %v844_v54 = vpack.c.bf16 %v840_v53, %v840_v53  ;;  %v2752_v55 = vpop.f32.mrb[9].mxu0 }
 0x9e8   :  { %2772 = vmatmul.mubr.msk.bf16.vlgmr.msra.gmra.mrb[12].mxu0 %vm238_vm2, %v844_v54 }
 0x9e9   :  { %v1008_v56 = vpop.f32.mrb[10].mxu0  ;;  %2791 = vmatprep.mubr.msk.bf16.mxu0 %vm3233_vm0, %v3232_v0  ;;  %2784 = vmatpush3.bf16.msra.mxu0 %v2915_v42 }
 0x9ea   :  { %v1012_v37 = vpack.c.bf16 %v1008_v56, %v1008_v56  ;;  %v2762_v57 = vpop.f32.mrb[11].mxu0  ;;  %2785 = vmatprep.subr.bf16.mxu0 %v3232_v0 }
 0x9ec   :  { %2766 = vmatmul.mubr.msk.bf16.vlgmr.msra.gmra.mrb[16].mxu1 %vm238_vm2, %v1012_v37 }
 0x9ed   :  { %2779 = vmatprep.mubr.msk.bf16.mxu1 %vm3233_vm0, %v3232_v0  ;;  %2776 = vmatpush3.bf16.msra.mxu1 %v2913_v17 }
 0x9ee   :  { %2777 = vmatprep.subr.bf16.mxu1 %v3232_v0  ;;  %2786 = vmatpush3.bf16.msra.mxu0 %v2916_v43 }
 0x9ef   :  { %2787 = vmatprep.subr.bf16.mxu0 %v3232_v0 }
 0x9f1   :  { %2778 = vmatpush3.bf16.msra.mxu1 %v2914_v22 }
 0x9f2   :  { %2795 = vmatprep.subr.bf16.mxu1 %v3232_v0  ;;  %2788 = vmatpush3.bf16.msra.mxu0 %v2917_v44 }
 0x9f3   :  { %2789 = vmatprep.subr.bf16.mxu0 %v3232_v0 }
 0x9f6   :  { %2790 = vmatpush3.bf16.msra.mxu0 %v2918_v13 }
 0x9f7   :  { %2808 = vmatprep.subr.mxu0 %v3232_v0 }
 0xabb   :  { %v1093_v58 = vpop.f32.mrb[12].mxu0 }
 0xabc   :  { %v2773_v59 = vpop.f32.mrb[13].mxu0 }
 0xabd   :  { %v1096_v60 = vpop.f32.mrb[14].mxu0 }
 0xabe   :  { %v2774_v61 = vpop.f32.mrb[15].mxu0 }
 0xabf   :  { %v1050_v62 = vpop.f32.mrb[16].mxu1 }
 0xac0   :  { %v1094_v63 = vadd.f32 %v1093_v58, %v1050_v62  ;;  %v2767_v1 = vpop.f32.mrb[17].mxu1 }
 0xac1   :  { %v1053_v2 = vpop.f32.mrb[18].mxu1 }
 0xac2   :  { %v1104_v3 = vadd.f32 %v1102_v38, %v1094_v63  ;;  %v2768_v4 = vpop.f32.mrb[19].mxu1 }
 0xac4   :  { %v1106_v7 = vadd.f32 %v1104_v3, %v3447_v6  ;;  %v1126_v6 = vmul.f32 0.03125, %v1122_v23 }
 0xac6   :  { %v1110_v8 = vsel %vm156_vm1, %v1106_v7, 0.0  ;;  %v1128_v24 = vadd.f32 1e-12, %v1126_v6 }
 0xac7   :  { %1111 = vadd.xlane.f32.xlu1 %v1110_v8  ;;  %v1244_v8 = vrot.slane %v3550_v36, %v3534_v10 }
 0xac8   :  { %2945 = vrsqrt.f32 %v1128_v24 }
 0xad2   :  { %v2946_v28 = vpop.eup %2945 }
 0xad3   :  { %v1132_v30 = vmul.f32 %v2946_v28, %v1116_v50 }
 0xad5   :  { %v1138_v33 = vmul.f32 %v1137_v29, %v1132_v30 }
 0xad7   :  { %v1144_v39 = vadd.f32 %v1143_v35, %v1138_v33 }
 0xb54   :  { %v1112_v9 = vpop.xlane.xlu1 %1111 }
 0xb55   :  { %v1115_v12 = vmul.f32 0.03125, %v1112_v9 }
 0xb57   :  { %v1117_v14 = vsub.f32 %v1106_v7, %v1115_v12 }
 0xb59   :  { %v1119_v15 = vmul.f32 %v1117_v14, %v1117_v14 }
 0xb5b   :  { %v1123_v16 = vsel %vm156_vm1, %v1119_v15, 0.0 }
 0xb5c   :  { %1124 = vadd.xlane.f32.xlu0 %v1123_v16 }
 0xbe9   :  { %v1125_v25 = vpop.xlane.xlu0 %1124 }
 0xbea   :  { %v1127_v26 = vmul.f32 0.03125, %v1125_v25 }
 0xbec   :  { %v1129_v20 = vadd.f32 1e-12, %v1127_v26 }
 0xbee   :  { %2947 = vrsqrt.f32 %v1129_v20 }
 0xbf8   :  { %v2948_v32 = vpop.eup %2947 }
 0xbf9   :  { %v1133_v34 = vmul.f32 %v2948_v32, %v1117_v14 }
 0xbfb   :  { %v1139_v38 = vmul.f32 %v1137_v29, %v1133_v34 }
 0xbfd   :  { %v1145_v40 = vadd.f32 %v1143_v35, %v1139_v38  ;;  %v2919_v38 = vld [vmem:[#allocation8 + $0x10] sm:$0xff]  }
 0xbff   :  { %v1146_v41 = vpack.c.bf16 %v1145_v40, %v1144_v39 }
 0xc01   :  { %2780 = vmatmul.mubr.msk.bf16.vlgmr.msra.gmra.mrb[20].mxu1 %vm156_vm1, %v1146_v41 }
 0xc02   :  { %2799 = vmatprep.mubr.msk.bf16.mxu1 %vm3233_vm0, %v3232_v0  ;;  %2796 = vmatpush3.bf16.msra.mxu1 %v2919_v38 }
 0xc03   :  { %2797 = vmatprep.subr.bf16.mxu1 %v3232_v0 }
 0xcd4   :  { %v1207_v46 = vpop.f32.mrb[20].mxu1 }
 0xcd5   :  { %v1208_v47 = vadd.f32 %v2593_v45, %v1207_v46  ;;  %v2781_v5 = vpop.f32.mrb[21].mxu1  ;;  %v1350_v46 = vsub.s32 5, %v3471_v18 }
 0xcd6   :  { %v1210_v48 = vpop.f32.mrb[22].mxu1 }
 0xcd7   :  { %v1216_v49 = vmul.f32 %v1208_v47, %v1208_v47  ;;  %v1211_v50 = vadd.f32 %v2593_v45, %v1210_v48  ;;  %v2782_v51 = vpop.f32.mrb[23].mxu1  ;;  %v1214_v63 = vmul.f32 0.5, %v1208_v47  ;;  %v1344_v45 = vsub.s32 4, %v3471_v18 }
 0xcd8   :  { %v1351_v48 = vrot.slane %v3550_v36, %v1350_v46 }
 0xcd9   :  { %v1218_v52 = vmul.f32 %v1216_v49, %v1208_v47  ;;  %v1217_v53 = vmul.f32 %v1211_v50, %v1211_v50  ;;  %v1215_v1 = vmul.f32 0.5, %v1211_v50 }
 0xcdb   :  { %v1220_v54 = vmul.f32 0.044715, %v1218_v52  ;;  %v1219_v55 = vmul.f32 %v1217_v53, %v1211_v50 }
 0xcdd   :  { %v1222_v56 = vadd.f32 %v1220_v54, %v1208_v47  ;;  %v1221_v37 = vmul.f32 0.044715, %v1219_v55  ;;  %v1345_v47 = vrot.slane %v3550_v36, %v1344_v45  ;;  %v2602_v36 = vld [vmem:[#allocation9 + $0x1] ss:$0 sm:$0xff] }
 0xcdf   :  { %v1224_v57 = vmul.f32 0.7978846, %v1222_v56  ;;  %v1223_v58 = vadd.f32 %v1221_v37, %v1211_v50 }
 0xce1   :  { %2949 = vtanh.f32 %v1224_v57  ;;  %v1225_v59 = vmul.f32 0.7978846, %v1223_v58 }
 0xce3   :  { %2951 = vtanh.f32 %v1225_v59 }
 0xceb   :  { %v2950_v60 = vpop.eup %2949 }
 0xcec   :  { %v1228_v61 = vadd.f32 1.0, %v2950_v60 }
 0xced   :  { %v2952_v62 = vpop.eup %2951 }
 0xcee   :  { %v1229_v2 = vadd.f32 1.0, %v2952_v62  ;;  %v1230_v3 = vmul.f32 %v1228_v61, %v1214_v63 }
 0xcf0   :  { %v1231_v4 = vmul.f32 %v1229_v2, %v1215_v1 }
 0xcf2   :  { %v1232_v7 = vpack.c.bf16 %v1231_v4, %v1230_v3 }
 0xcf4   :  { %2792 = vmatmul.mubr.msk.bf16.vlgmr.msra.gmra.mrb[16].mxu0 %vm1269_vm4, %v1232_v7 }
 0xcf5   :  { %2810 = vmatprep.mubr.msk.f32.mxu0 %vm3233_vm0, %v3232_v0 }
 0xdc7   :  { %v1307_v9 = vpop.f32.mrb[16].mxu0 }
 0xdc8   :  { %v1308_v12 = vadd.f32 %v1307_v9, %v1244_v8  ;;  %v2793_v14 = vpop.f32.mrb[17].mxu0 }
 0xdc9   :  { %v1310_v15 = vpop.f32.mrb[18].mxu0 }
 0xdca   :  { %v1311_v16 = vadd.f32 %v1310_v15, %v1244_v8  ;;  %v2794_v17 = vpop.f32.mrb[19].mxu0  ;;  %v1314_v22 = vadd.f32 %v1308_v12, %v1144_v39  ;;  %v2920_v39 = vld [vmem:[#allocation8 + $0x18] sm:$0xff]  }
 0xdcb   :  { %2798 = vmatpush3.bf16.msra.mxu1 %v2920_v39 }
 0xdcc   :  { %v1316_v23 = vsel %vm156_vm1, %v1314_v22, 0.0  ;;  %v1315_v6 = vadd.f32 %v1311_v16, %v1145_v40  ;;  %2803 = vmatprep.subr.mxu1 %v3232_v0 }
 0xdcd   :  { %1317 = vadd.xlane.f32.xlu0 %v1316_v23 }
 0xdce   :  { %v1319_v24 = vsel %vm156_vm1, %v1315_v6, 0.0 }
 0xdcf   :  { %1320 = vadd.xlane.f32.xlu1 %v1319_v24 }
 0xe5a   :  { %v1318_v25 = vpop.xlane.xlu0 %1317 }
 0xe5b   :  { %v1322_v26 = vmul.f32 0.03125, %v1318_v25 }
 0xe5c   :  { %v1321_v20 = vpop.xlane.xlu1 %1320 }
 0xe5d   :  { %v1324_v28 = vsub.f32 %v1314_v22, %v1322_v26  ;;  %v1323_v29 = vmul.f32 0.03125, %v1321_v20 }
 0xe5f   :  { %v1325_v30 = vsub.f32 %v1315_v6, %v1323_v29  ;;  %v1326_v32 = vmul.f32 %v1324_v28, %v1324_v28 }
 0xe61   :  { %v1328_v33 = vsel %vm156_vm1, %v1326_v32, 0.0  ;;  %v1327_v34 = vmul.f32 %v1325_v30, %v1325_v30 }
 0xe62   :  { %1329 = vadd.xlane.f32.xlu0 %v1328_v33  ;;  %v2921_v33 = vld [vmem:[#allocation11 + $0x18] sm:$0xff]  }
 0xe63   :  { %v1331_v35 = vsel %vm156_vm1, %v1327_v34, 0.0 }
 0xe64   :  { %1332 = vadd.xlane.f32.xlu1 %v1331_v35 }
 0xeef   :  { %v1330_v40 = vpop.xlane.xlu0 %1329 }
 0xef0   :  { %v1334_v41 = vmul.f32 0.03125, %v1330_v40 }
 0xef1   :  { %v1333_v42 = vpop.xlane.xlu1 %1332 }
 0xef2   :  { %v1336_v43 = vadd.f32 1e-12, %v1334_v41  ;;  %v1335_v44 = vmul.f32 0.03125, %v1333_v42 }
 0xef4   :  { %2953 = vrsqrt.f32 %v1336_v43  ;;  %v1337_v13 = vadd.f32 1e-12, %v1335_v44  ;;  %v3661_v43 = vld [vmem:[#allocation11 + $0x10] sm:$0xff]  }
 0xef6   :  { %2955 = vrsqrt.f32 %v1337_v13 }
 0xefe   :  { %v2954_v5 = vpop.eup %2953 }
 0xeff   :  { %v1340_v49 = vmul.f32 %v2954_v5, %v1324_v28 }
 0xf00   :  { %v2956_v50 = vpop.eup %2955 }
 0xf01   :  { %v1346_v51 = vmul.f32 %v1345_v47, %v1340_v49  ;;  %v1341_v52 = vmul.f32 %v2956_v50, %v1325_v30 }
 0xf03   :  { %v1352_v53 = vadd.f32 %v1351_v48, %v1346_v51  ;;  %v1347_v54 = vmul.f32 %v1345_v47, %v1341_v52 }
 0xf05   :  { %1354 = vst.msk [vmem:[#allocation2] sm:$0xff] %vm156_vm1, %v1352_v53  ;;  %v1353_v55 = vadd.f32 %v1351_v48, %v1347_v54 }
 0xf07   :  { %1355 = vst.msk [vmem:[#allocation2 + $0x8] sm:$0xff] %vm156_vm1, %v1353_v55 }
 0xf0c   :  { %v3614_v56 = vld [vmem:[#allocation2] sm:$0xff] }
 0xf0e   :  { %v3616_v37 = vld [vmem:[#allocation2 + $0x8] sm:$0xff] }
 0xf0f   :  { %v1360_v57 = vpack.c.bf16 %v3616_v37, %v3614_v56 }
 0xf11   :  { %2800 = vmatmul.mubr.msk.bf16.vlgmr.msra.gmra.mrb[24].mxu1 %vm156_vm1, %v1360_v57 }
 0xf12   :  { %2805 = vmatprep.mubr.msk.f32.mxu1 %vm3233_vm0, %v3232_v0 }
 0xfe4   :  { %v1423_v58 = vpop.f32.mrb[24].mxu1 }
 0xfe5   :  { %v1424_v59 = vadd.f32 %v2602_v36, %v1423_v58  ;;  %v2801_v60 = vpop.f32.mrb[25].mxu1 }
 0xfe6   :  { %v1426_v61 = vpop.f32.mrb[26].mxu1 }
 0xfe7   :  { %v3623_v62 = vadd.f32 %v2602_v36, %v1426_v61  ;;  %1604 = vrot.lane.b32.xlu1 %v1424_v59, %s3235_s10  ;;  %1436 = vrot.lane.b32.xlu0 %v1424_v59, %s3234_s8  ;;  %v2802_v63 = vpop.f32.mrb[27].mxu1 }
 0xfeb   :  { %1602 = vrot.lane.b32.xlu1 %v1424_v59, %s3236_s7 }
0x1059   :  { %v1437_v1 = vpop.permute.xlu0 %1436  ;;  %v1605_v2 = vpop.permute.xlu1 %1604 }
0x105a   :  { %2804 = vmatpush3.xpose.msk.msra.mxu1 %vm238_vm2, %v1437_v1 }
0x105b   :  { %2813 = vmatprep.subr.mxu1 %v3232_v0 }
0x105d   :  { %2806 = vmatmul.mubr.msk.f32.vlgmr.msra.gmra.mrb[28].mxu1 %vm238_vm2, %v1424_v59  ;;  %v1603_v3 = vpop.permute.xlu1 %1602 }
0x105e   :  { %2814 = vmatpush3.xpose.msk.msra.mxu1 %vm238_vm2, %v1605_v2  ;;  %2815 = vmatprep.mubr.msk.f32.mxu1 %vm3233_vm0, %v3232_v0 }
0x105f   :  { %2823 = vmatprep.subr.bf16.mxu1 %v3232_v0 }
0x1061   :  { %2816 = vmatmul.mubr.msk.f32.vlgmr.msra.gmra.mrb[30].mxu1 %vm238_vm2, %v1603_v3 }
0x1062   :  { %2825 = vmatprep.mubr.msk.bf16.mxu1 %vm3233_vm0, %v3232_v0  ;;  %2824 = vmatpush3.bf16.msra.mxu1 %v2921_v33 }
0x1063   :  { %2835 = vmatprep.subr.mxu1 %v3232_v0 }
0x1130   :  { %v1508_v4 = vpop.f32.mrb[28].mxu1 }
0x1131   :  { %v1512_v7 = vmul.f32 0.25, %v1508_v4  ;;  %v2807_v8 = vpop.f32.mrb[29].mxu1 }
0x1133   :  { %v1513_v9 = vadd.f32 %v1512_v7, %v3480_v21 }
0x1134   :  { %v1676_v12 = vpop.f32.mrb[30].mxu1 }
0x1135   :  { %v1680_v14 = vmul.f32 0.25, %v1676_v12  ;;  %v2817_v15 = vpop.f32.mrb[31].mxu1  ;;  %v1514_v16 = vsel %vm319_vm3, %v1513_v9, -inf }
0x1136   :  { %1515 = vmax.xlane.f32.xlu0 %v1514_v16 }
0x1137   :  { %v1681_v17 = vadd.f32 %v1680_v14, %v3480_v21 }
0x1139   :  { %v1682_v22 = vsel %vm319_vm3, %v1681_v17, -inf }
0x113a   :  { %1683 = vmax.xlane.f32.xlu1 %v1682_v22 }
0x114b   :  { %1525 = vrot.lane.b32.xlu1 %v1424_v59, %s3223_s12 }
0x114f   :  { %1869 = vrot.lane.b32.xlu1 %v3623_v62, %s3234_s8 }
0x1153   :  { %2037 = vrot.lane.b32.xlu1 %v3623_v62, %s3235_s10 }
0x11c3   :  { %v1516_v23 = vpop.xlane.xlu0 %1515 }
0x11c4   :  { %v1517_v6 = vsub.f32 %v1513_v9, %v1516_v23 }
0x11c6   :  { %v1518_v24 = vmul.f32 1.442695, %v1517_v6 }
0x11c7   :  { %v1684_v25 = vpop.xlane.xlu1 %1683 }
0x11c8   :  { %2957 = vpow2.f32 %v1518_v24  ;;  %v1685_v26 = vsub.f32 %v1681_v17, %v1684_v25 }
0x11ca   :  { %v1686_v20 = vmul.f32 1.442695, %v1685_v26 }
0x11cb   :  { %v1526_v28 = vpop.permute.xlu1 %1525 }
0x11cc   :  { %2959 = vpow2.f32 %v1686_v20  ;;  %2809 = vmatpush3.msra.mxu0 %v1526_v28 }
0x11cd   :  { %2818 = vmatprep.subr.mxu0 %v3232_v0 }
0x11cf   :  { %v1870_v50 = vpop.permute.xlu1 %1869 }
0x11d2   :  { %v2958_v21 = vpop.eup %2957 }
0x11d3   :  { %v1520_v29 = vsel %vm319_vm3, %v2958_v21, 0.0  ;;  %v2038_v51 = vpop.permute.xlu1 %2037 }
0x11d4   :  { %1521 = vadd.xlane.f32.xlu0 %v1520_v29 }
0x11d6   :  { %v2960_v30 = vpop.eup %2959 }
0x11d7   :  { %v1688_v32 = vsel %vm319_vm3, %v2960_v30, 0.0 }
0x11d8   :  { %1689 = vadd.xlane.f32.xlu0 %v1688_v32 }
0x11ee   :  { %1693 = vrot.lane.b32.xlu0 %v1424_v59, %s3237_s17 }
0x11f2   :  { %2035 = vrot.lane.b32.xlu0 %v3623_v62, %s3236_s7 }
0x1261   :  { %v1522_v34 = vpop.xlane.xlu0 %1521 }
0x1262   :  { %2961 = vrcp.f32 %v1522_v34 }
0x1265   :  { %v1690_v35 = vpop.xlane.xlu0 %1689 }
0x1266   :  { %2963 = vrcp.f32 %v1690_v35 }
0x1269   :  { %v1694_v40 = vpop.permute.xlu0 %1693 }
0x126c   :  { %v2962_v38 = vpop.eup %2961 }
0x126d   :  { %v1524_v39 = vmul.f32 %v2962_v38, %v2958_v21  ;;  %v2036_v52 = vpop.permute.xlu0 %2035 }
0x126f   :  { %2811 = vmatmul.mubr.msk.f32.vlgmr.msra.gmra.mrb[20].mxu0 %vm319_vm3, %v1524_v39 }
0x1270   :  { %v2964_v41 = vpop.eup %2963  ;;  %2819 = vmatpush3.msra.mxu0 %v1694_v40  ;;  %2820 = vmatprep.mubr.msk.f32.mxu0 %vm3233_vm0, %v3232_v0 }
0x1271   :  { %v1692_v42 = vmul.f32 %v2964_v41, %v2960_v30  ;;  %2829 = vmatprep.subr.bf16.mxu0 %v3232_v0 }
0x1273   :  { %2821 = vmatmul.mubr.msk.f32.vlgmr.msra.gmra.mrb[22].mxu0 %vm319_vm3, %v1692_v42 }
0x1274   :  { %2831 = vmatprep.mubr.msk.bf16.mxu0 %vm3233_vm0, %v3232_v0  ;;  %2830 = vmatpush3.bf16.msra.mxu0 %v3661_v43 }
0x1275   :  { %2840 = vmatprep.subr.mxu0 %v3232_v0 }
0x1342   :  { %v1597_v44 = vpop.f32.mrb[20].mxu0 }
0x1343   :  { %v1601_v13 = vpack.c.bf16 %v1597_v44, %v1597_v44  ;;  %v2812_v47 = vpop.f32.mrb[21].mxu0 }
0x1345   :  { %2832 = vmatmul.mubr.msk.bf16.vlgmr.msra.gmra.mrb[24].mxu0 %vm238_vm2, %v1601_v13 }
0x1346   :  { %v1765_v5 = vpop.f32.mrb[22].mxu0  ;;  %2842 = vmatprep.mubr.msk.f32.mxu0 %vm3233_vm0, %v3232_v0 }
0x1347   :  { %v1769_v48 = vpack.c.bf16 %v1765_v5, %v1765_v5  ;;  %v2822_v49 = vpop.f32.mrb[23].mxu0 }
0x1349   :  { %2826 = vmatmul.mubr.msk.bf16.vlgmr.msra.gmra.mrb[32].mxu1 %vm238_vm2, %v1769_v48 }
0x134a   :  { %2836 = vmatpush3.xpose.msk.msra.mxu1 %vm238_vm2, %v1870_v50  ;;  %2837 = vmatprep.mubr.msk.f32.mxu1 %vm3233_vm0, %v3232_v0 }
0x134b   :  { %2845 = vmatprep.subr.mxu1 %v3232_v0 }
0x1351   :  { %2838 = vmatmul.mubr.msk.f32.vlgmr.msra.gmra.mrb[36].mxu1 %vm238_vm2, %v3623_v62 }
0x1352   :  { %2846 = vmatpush3.xpose.msk.msra.mxu1 %vm238_vm2, %v2038_v51  ;;  %2847 = vmatprep.mubr.msk.f32.mxu1 %vm3233_vm0, %v3232_v0 }
0x1353   :  { %2855 = vmatprep.subr.bf16.mxu1 %v3232_v0 }
0x1355   :  { %2848 = vmatmul.mubr.msk.f32.vlgmr.msra.gmra.mrb[38].mxu1 %vm238_vm2, %v2036_v52 }
0x1356   :  { %2856 = vmatpush3.bf16.msra.mxu1 %v2921_v33  ;;  %2857 = vmatprep.mubr.msk.bf16.mxu1 %vm3233_vm0, %v3232_v0 }
0x1357   :  { %2867 = vmatprep.subr.bf16.mxu1 %v3232_v0 }
0x1418   :  { %v1862_v53 = vpop.f32.mrb[24].mxu0 }
0x1419   :  { %v2833_v54 = vpop.f32.mrb[25].mxu0 }
0x141a   :  { %v1865_v55 = vpop.f32.mrb[26].mxu0 }
0x141b   :  { %v2834_v57 = vpop.f32.mrb[27].mxu0 }
0x141c   :  { %v1813_v36 = vpop.f32.mrb[32].mxu1 }
0x141d   :  { %v1863_v58 = vadd.f32 %v1862_v53, %v1813_v36  ;;  %v2827_v59 = vpop.f32.mrb[33].mxu1 }
0x141e   :  { %v1816_v60 = vpop.f32.mrb[34].mxu1 }
0x141f   :  { %v2828_v61 = vpop.f32.mrb[35].mxu1 }
0x1424   :  { %v1941_v63 = vpop.f32.mrb[36].mxu1 }
0x1425   :  { %v1945_v1 = vmul.f32 0.25, %v1941_v63  ;;  %v2839_v2 = vpop.f32.mrb[37].mxu1 }
0x1427   :  { %v1946_v3 = vadd.f32 %v1945_v1, %v3538_v11 }
0x1428   :  { %v2109_v4 = vpop.f32.mrb[38].mxu1 }
0x1429   :  { %v2113_v7 = vmul.f32 0.25, %v2109_v4  ;;  %v2849_v8 = vpop.f32.mrb[39].mxu1  ;;  %v1947_v9 = vsel %vm319_vm3, %v1946_v3, -inf }
0x142a   :  { %1948 = vmax.xlane.f32.xlu1 %v1947_v9  ;;  %v2924_v8 = vld [vmem:[#allocation12 + $0x18] sm:$0xff]  }
0x142b   :  { %v2114_v12 = vadd.f32 %v2113_v7, %v3538_v11  ;;  %v3693_v11 = vld [vmem:[#allocation17 + $0x8] sm:$0x3f]  ;;  %v2923_v7 = vld [vmem:[#allocation12 + $0x10] sm:$0xff]  }
0x142c   :  { %v2292_v28 = vrot.slane %v3693_v11, %v3474_v19 }
0x142d   :  { %v2115_v14 = vsel %vm319_vm3, %v2114_v12, -inf }
0x142e   :  { %2116 = vmax.xlane.f32.xlu0 %v2115_v14  ;;  %v2293_v21 = vadd.f32 %v2292_v28, %v1863_v58 }
0x1430   :  { %v2295_v29 = vadd.f32 %v2293_v21, %v3614_v56 }
0x1432   :  { %v2297_v30 = vsel %vm156_vm1, %v2295_v29, 0.0 }
0x14b7   :  { %v1949_v15 = vpop.xlane.xlu1 %1948 }
0x14b8   :  { %v1950_v16 = vsub.f32 %v1946_v3, %v1949_v15 }
0x14ba   :  { %v1951_v17 = vmul.f32 1.442695, %v1950_v16 }
0x14bb   :  { %v2117_v22 = vpop.xlane.xlu0 %2116 }
0x14bc   :  { %2965 = vpow2.f32 %v1951_v17  ;;  %v2118_v23 = vsub.f32 %v2114_v12, %v2117_v22  ;;  %v2326_v22 = vrot.slane %v3693_v11, %v1136_v27  ;;  %v2927_v27 = vld [vmem:[#allocation15 + $0x30] sm:$0xff]  }
0x14be   :  { %v2119_v6 = vmul.f32 1.442695, %v2118_v23 }
0x14c0   :  { %2967 = vpow2.f32 %v2119_v6 }
0x14c6   :  { %v2966_v24 = vpop.eup %2965 }
0x14c7   :  { %v1953_v25 = vsel %vm319_vm3, %v2966_v24, 0.0 }
0x14c8   :  { %1954 = vadd.xlane.f32.xlu0 %v1953_v25 }
0x14ca   :  { %v2968_v26 = vpop.eup %2967 }
0x14cb   :  { %v2121_v20 = vsel %vm319_vm3, %v2968_v26, 0.0 }
0x14cc   :  { %2122 = vadd.xlane.f32.xlu1 %v2121_v20 }
0x14dd   :  { %2126 = vrot.lane.b32.xlu1 %v3623_v62, %s3237_s17 }
0x14de   :  { %1958 = vrot.lane.b32.xlu0 %v3623_v62, %s3223_s12  ;;  %s3238_s12 = smov [#allocation18]  }
0x14df   :  { %s2558_s13 = sshll.u32 %s3238_s12, 4  ;;  %s2559_s13 = int_to_ptr.vmem [resolvable:$true] %s2558_s13 }
0x14e0   :  { %s3183_s18 = scalar_lea.vmem %s2559_s13, 32  ;;  %p3188_p3 = scmp.lt.s32.totalorder %s2559_s13, %s2559_s13 }
0x14e1   :  { %p3184_p2 = scmp.ne.s32.totalorder %s2559_s13, %s3183_s18  ;;  %p3189_p4 = scmp.lt.s32.totalorder %s3183_s18, %s3183_s18 }
0x14e3   :  { %p3190_p5 = por %p3189_p4, %p3188_p3 }
0x14e5   :  { %p3191_p6 = pnand %p3190_p5, %p3184_p2 }
0x1501   :  { %2298 = vadd.xlane.f32.xlu1 %v2297_v30  ;;  %v2925_v30 = vld [vmem:[#allocation15 + $0x20] sm:$0xff]  }
0x1555   :  { %v1955_v32 = vpop.xlane.xlu0 %1954 }
0x1556   :  { %2969 = vrcp.f32 %v1955_v32  ;;  %v2926_v32 = vld [vmem:[#allocation15 + $0x28] sm:$0xff]  }
0x1559   :  { %v2123_v33 = vpop.xlane.xlu1 %2122  ;;  %v1959_v34 = vpop.permute.xlu0 %1958 }
0x155a   :  { %2971 = vrcp.f32 %v2123_v33  ;;  %2841 = vmatpush3.msra.mxu0 %v1959_v34  ;;  %v2928_v33 = vld [vmem:[#allocation15 + $0x38] sm:$0xff]  }
0x155b   :  { %2850 = vmatprep.subr.mxu0 %v3232_v0 }
0x155d   :  { %v2127_v38 = vpop.permute.xlu1 %2126 }
0x1560   :  { %v2970_v62 = vpop.eup %2969 }
0x1561   :  { %v1957_v35 = vmul.f32 %v2970_v62, %v2966_v24 }
0x1563   :  { %2843 = vmatmul.mubr.msk.f32.vlgmr.msra.gmra.mrb[28].mxu0 %vm319_vm3, %v1957_v35 }
0x1564   :  { %v2972_v19 = vpop.eup %2971  ;;  %2851 = vmatpush3.msra.mxu0 %v2127_v38  ;;  %2852 = vmatprep.mubr.msk.f32.mxu0 %vm3233_vm0, %v3232_v0 }
0x1565   :  { %v2125_v56 = vmul.f32 %v2972_v19, %v2968_v26  ;;  %2861 = vmatprep.subr.bf16.mxu0 %v3232_v0  ;;  %v2332_v26 = vrot.slane %v3693_v11, %v1142_v31  ;;  %v2624_v31 = vld [vmem:[#allocation14 + $0x1] ss:$0 sm:$0xff] }
0x1567   :  { %2853 = vmatmul.mubr.msk.f32.vlgmr.msra.gmra.mrb[30].mxu0 %vm319_vm3, %v2125_v56 }
0x1568   :  { %2862 = vmatpush3.bf16.msra.mxu0 %v3661_v43  ;;  %2863 = vmatprep.mubr.msk.bf16.mxu0 %vm3233_vm0, %v3232_v0 }
0x1569   :  { %2875 = vmatprep.subr.bf16.mxu0 %v3232_v0 }
0x158e   :  { %v2299_v43 = vpop.xlane.xlu1 %2298 }
0x158f   :  { %v2303_v49 = vmul.f32 0.03125, %v2299_v43 }
0x1591   :  { %v2305_v55 = vsub.f32 %v2295_v29, %v2303_v49 }
0x1593   :  { %v2307_v60 = vmul.f32 %v2305_v55, %v2305_v55 }
0x1595   :  { %v2309_v61 = vsel %vm156_vm1, %v2307_v60, 0.0 }
0x1636   :  { %v2030_v39 = vpop.f32.mrb[28].mxu0 }
0x1637   :  { %v2034_v40 = vpack.c.bf16 %v2030_v39, %v2030_v39  ;;  %v2844_v41 = vpop.f32.mrb[29].mxu0 }
0x1639   :  { %2864 = vmatmul.mubr.msk.bf16.vlgmr.msra.gmra.mrb[32].mxu0 %vm238_vm2, %v2034_v40 }
0x163a   :  { %v2198_v42 = vpop.f32.mrb[30].mxu0  ;;  %2883 = vmatprep.mubr.msk.bf16.mxu0 %vm3233_vm0, %v3232_v0  ;;  %2876 = vmatpush3.bf16.msra.mxu0 %v2925_v30 }
0x163b   :  { %v2202_v44 = vpack.c.bf16 %v2198_v42, %v2198_v42  ;;  %v2854_v13 = vpop.f32.mrb[31].mxu0  ;;  %2877 = vmatprep.subr.bf16.mxu0 %v3232_v0 }
0x163d   :  { %2858 = vmatmul.mubr.msk.bf16.vlgmr.msra.gmra.mrb[40].mxu1 %vm238_vm2, %v2202_v44 }
0x163e   :  { %2871 = vmatprep.mubr.msk.bf16.mxu1 %vm3233_vm0, %v3232_v0  ;;  %2868 = vmatpush3.bf16.msra.mxu1 %v2923_v7 }
0x163f   :  { %2869 = vmatprep.subr.bf16.mxu1 %v3232_v0  ;;  %2878 = vmatpush3.bf16.msra.mxu0 %v2926_v32 }
0x1640   :  { %2879 = vmatprep.subr.bf16.mxu0 %v3232_v0 }
0x1642   :  { %2870 = vmatpush3.bf16.msra.mxu1 %v2924_v8 }
0x1643   :  { %2880 = vmatpush3.bf16.msra.mxu0 %v2927_v27 }
0x1644   :  { %2881 = vmatprep.subr.bf16.mxu0 %v3232_v0 }
0x1647   :  { %2882 = vmatpush3.bf16.msra.mxu0 %v2928_v33 }
0x170c   :  { %v2283_v47 = vpop.f32.mrb[32].mxu0 }
0x170d   :  { %v2865_v5 = vpop.f32.mrb[33].mxu0 }
0x170e   :  { %v2286_v48 = vpop.f32.mrb[34].mxu0 }
0x170f   :  { %v2866_v50 = vpop.f32.mrb[35].mxu0 }
0x1710   :  { %v2240_v51 = vpop.f32.mrb[40].mxu1 }
0x1711   :  { %v2284_v52 = vadd.f32 %v2283_v47, %v2240_v51  ;;  %v2859_v53 = vpop.f32.mrb[41].mxu1 }
0x1712   :  { %v2243_v54 = vpop.f32.mrb[42].mxu1 }
0x1713   :  { %v2294_v57 = vadd.f32 %v2292_v28, %v2284_v52  ;;  %v2860_v36 = vpop.f32.mrb[43].mxu1 }
0x1714   :  { %v2436_v36 = vrot.slane %v3693_v11, %v3534_v10 }
0x1715   :  { %v2296_v58 = vadd.f32 %v2294_v57, %v3616_v37 }
0x1717   :  { %v2300_v59 = vsel %vm156_vm1, %v2296_v58, 0.0 }
0x1718   :  { %2301 = vadd.xlane.f32.xlu0 %v2300_v59 }
0x171c   :  { %2310 = vadd.xlane.f32.xlu0 %v2309_v61 }
0x17a5   :  { %v2302_v63 = vpop.xlane.xlu0 %2301 }
0x17a6   :  { %v2304_v1 = vmul.f32 0.03125, %v2302_v63 }
0x17a8   :  { %v2306_v2 = vsub.f32 %v2296_v58, %v2304_v1 }
0x17a9   :  { %v2311_v37 = vpop.xlane.xlu0 %2310 }
0x17aa   :  { %v2308_v3 = vmul.f32 %v2306_v2, %v2306_v2  ;;  %v2315_v9 = vmul.f32 0.03125, %v2311_v37 }
0x17ac   :  { %v2312_v4 = vsel %vm156_vm1, %v2308_v3, 0.0  ;;  %v2317_v12 = vadd.f32 1e-12, %v2315_v9 }
0x17ad   :  { %2313 = vadd.xlane.f32.xlu1 %v2312_v4 }
0x17ae   :  { %2973 = vrsqrt.f32 %v2317_v12 }
0x17b8   :  { %v2974_v17 = vpop.eup %2973 }
0x17b9   :  { %v2321_v23 = vmul.f32 %v2974_v17, %v2305_v55 }
0x17bb   :  { %v2327_v24 = vmul.f32 %v2326_v22, %v2321_v23 }
0x17bd   :  { %v2333_v28 = vadd.f32 %v2332_v26, %v2327_v24 }
0x183a   :  { %v2314_v14 = vpop.xlane.xlu1 %2313 }
0x183b   :  { %v2316_v15 = vmul.f32 0.03125, %v2314_v14 }
0x183d   :  { %v2318_v16 = vadd.f32 1e-12, %v2316_v15 }
0x183f   :  { %2975 = vrsqrt.f32 %v2318_v16 }
0x1849   :  { %v2976_v6 = vpop.eup %2975 }
0x184a   :  { %v2322_v25 = vmul.f32 %v2976_v6, %v2306_v2 }
0x184c   :  { %v2328_v20 = vmul.f32 %v2326_v22, %v2322_v25 }
0x184e   :  { %v2334_v21 = vadd.f32 %v2332_v26, %v2328_v20 }
0x1850   :  { %v2335_v29 = vpack.c.bf16 %v2334_v21, %v2333_v28 }
0x1852   :  { %2872 = vmatmul.mubr.msk.bf16.vlgmr.msra.gmra.mrb[44].mxu1 %vm156_vm1, %v2335_v29  ;;  %v2542_v29 = vrot.slane %v3693_v11, %v1350_v46 }
0x1925   :  { %v2398_v34 = vpop.f32.mrb[44].mxu1 }
0x1926   :  { %v2399_v62 = vadd.f32 %v2624_v31, %v2398_v34  ;;  %v2873_v35 = vpop.f32.mrb[45].mxu1 }
0x1927   :  { %v2401_v38 = vpop.f32.mrb[46].mxu1 }
0x1928   :  { %v2407_v19 = vmul.f32 %v2399_v62, %v2399_v62  ;;  %v2402_v56 = vadd.f32 %v2624_v31, %v2401_v38  ;;  %v2874_v39 = vpop.f32.mrb[47].mxu1  ;;  %v2405_v51 = vmul.f32 0.5, %v2399_v62 }
0x192a   :  { %v2409_v40 = vmul.f32 %v2407_v19, %v2399_v62  ;;  %v2408_v41 = vmul.f32 %v2402_v56, %v2402_v56  ;;  %v2406_v52 = vmul.f32 0.5, %v2402_v56 }
0x192c   :  { %v2411_v42 = vmul.f32 0.044715, %v2409_v40  ;;  %v2410_v44 = vmul.f32 %v2408_v41, %v2402_v56 }
0x192e   :  { %v2413_v13 = vadd.f32 %v2411_v42, %v2399_v62  ;;  %v2412_v43 = vmul.f32 0.044715, %v2410_v44 }
0x1930   :  { %v2415_v47 = vmul.f32 0.7978846, %v2413_v13  ;;  %v2414_v5 = vadd.f32 %v2412_v43, %v2402_v56 }
0x1932   :  { %2977 = vtanh.f32 %v2415_v47  ;;  %v2416_v0 = vmul.f32 0.7978846, %v2414_v5 }
0x1934   :  { %2979 = vtanh.f32 %v2416_v0 }
0x193c   :  { %v2978_v48 = vpop.eup %2977 }
0x193d   :  { %v2419_v49 = vadd.f32 1.0, %v2978_v48 }
0x193e   :  { %v2980_v50 = vpop.eup %2979 }
0x193f   :  { %v2420_v53 = vadd.f32 1.0, %v2980_v50  ;;  %v2421_v54 = vmul.f32 %v2419_v49, %v2405_v51 }
0x1941   :  { %v2422_v55 = vmul.f32 %v2420_v53, %v2406_v52 }
0x1943   :  { %v2423_v57 = vpack.c.bf16 %v2422_v55, %v2421_v54 }
0x1945   :  { %2884 = vmatmul.mubr.msk.bf16.vlgmr.msra.gmra.mrb[36].mxu0 %vm1269_vm4, %v2423_v57 }
0x1a18   :  { %v2498_v58 = vpop.f32.mrb[36].mxu0 }
0x1a19   :  { %v2499_v59 = vadd.f32 %v2498_v58, %v2436_v36  ;;  %v2885_v60 = vpop.f32.mrb[37].mxu0 }
0x1a1a   :  { %v2501_v61 = vpop.f32.mrb[38].mxu0 }
0x1a1b   :  { %v2502_v63 = vadd.f32 %v2501_v61, %v2436_v36  ;;  %v2886_v1 = vpop.f32.mrb[39].mxu0  ;;  %v2505_v2 = vadd.f32 %v2499_v59, %v2333_v28  ;;  %v2536_v28 = vrot.slane %v3693_v11, %v1344_v45 }
0x1a1d   :  { %v2507_v3 = vsel %vm156_vm1, %v2505_v2, 0.0  ;;  %v2506_v4 = vadd.f32 %v2502_v63, %v2334_v21 }
0x1a1e   :  { %2508 = vadd.xlane.f32.xlu0 %v2507_v3 }
0x1a1f   :  { %v2510_v7 = vsel %vm156_vm1, %v2506_v4, 0.0 }
0x1a20   :  { %2511 = vadd.xlane.f32.xlu1 %v2510_v7 }
0x1aab   :  { %v2509_v8 = vpop.xlane.xlu0 %2508 }
0x1aac   :  { %v2513_v37 = vmul.f32 0.03125, %v2509_v8 }
0x1aad   :  { %v2512_v9 = vpop.xlane.xlu1 %2511 }
0x1aae   :  { %v2515_v12 = vsub.f32 %v2505_v2, %v2513_v37  ;;  %v2514_v14 = vmul.f32 0.03125, %v2512_v9 }
0x1ab0   :  { %v2516_v10 = vsub.f32 %v2506_v4, %v2514_v14  ;;  %v2517_v15 = vmul.f32 %v2515_v12, %v2515_v12 }
0x1ab2   :  { %v2519_v16 = vsel %vm156_vm1, %v2517_v15, 0.0  ;;  %v2518_v17 = vmul.f32 %v2516_v10, %v2516_v10 }
0x1ab3   :  { %2520 = vadd.xlane.f32.xlu0 %v2519_v16 }
0x1ab4   :  { %v2522_v22 = vsel %vm156_vm1, %v2518_v17, 0.0 }
0x1ab5   :  { %2523 = vadd.xlane.f32.xlu1 %v2522_v22 }
0x1b40   :  { %v2521_v23 = vpop.xlane.xlu0 %2520 }
0x1b41   :  { %v2525_v6 = vmul.f32 0.03125, %v2521_v23 }
0x1b42   :  { %v2524_v24 = vpop.xlane.xlu1 %2523 }
0x1b43   :  { %v2527_v25 = vadd.f32 1e-12, %v2525_v6  ;;  %v2526_v26 = vmul.f32 0.03125, %v2524_v24 }
0x1b45   :  { %2981 = vrsqrt.f32 %v2527_v25  ;;  %v2528_v20 = vadd.f32 1e-12, %v2526_v26 }
0x1b47   :  { %2983 = vrsqrt.f32 %v2528_v20 }
0x1b4f   :  { %v2982_v21 = vpop.eup %2981 }
0x1b50   :  { %v2531_v30 = vmul.f32 %v2982_v21, %v2515_v12 }
0x1b51   :  { %v2984_v32 = vpop.eup %2983 }
0x1b52   :  { %v2537_v27 = vmul.f32 %v2536_v28, %v2531_v30  ;;  %v2532_v33 = vmul.f32 %v2984_v32, %v2516_v10 }
0x1b54   :  { %v2543_v31 = vadd.f32 %v2542_v29, %v2537_v27  ;;  %v2538_v34 = vmul.f32 %v2536_v28, %v2532_v33 }
0x1b56   :  { %2545 = vst.msk [vmem:[#allocation2] sm:$0xff] %vm156_vm1, %v2543_v31  ;;  %v2544_v62 = vadd.f32 %v2542_v29, %v2538_v34 }
0x1b58   :  { %2546 = vst.msk [vmem:[#allocation2 + $0x8] sm:$0xff] %vm156_vm1, %v2544_v62 }
0x1b5d   :  { %v2547_v45 = vld [vmem:[#allocation2] sm:$0xff] }
0x1b5e   :  { %2550 = vst.msk [vmem:[#allocation18] sm:$0x1] %vm2549_vm5, %v2547_v45 }
0x1b5f   :  { %v2548_v18 = vld [vmem:[#allocation2 + $0x8] sm:$0xff] }
0x1b60   :  { %2551 = vst.msk [vmem:[#allocation18 + $0x1] sm:$0x1] %vm2549_vm5, %v2548_v18 }
0x1b61   :  { %3194 = shalt.err (!%p3191_p6)
}
0x1b62   :  { %s3195_s19 = scalar_lea.hbm %s3766_s9, 32 }
0x1b63   :  { %p3196_p7 = scmp.ne.s32.totalorder %s3766_s9, %s3195_s19  ;;  %p3199_p8 = scmp.lt.u32.totalorder %s3195_s19, %s3766_s9 }
0x1b65   :  { %p3201_p9 = pnand %p3199_p8, %p3196_p7 }
0x1b67   :  { %3204 = shalt.err (!%p3201_p9)
}
0x1b68   :  { %2561 = dma.vmem_to_hbm [thread:$0]  %s2559_s13, 32, %s3766_s9, [#allocation5]  }
0x1b69   :  { %3215 = dma.done.wait [#allocation5], 32  }
0x1b6a   :  { %3216 = vsyncadd [#allocation5], 4294967264 }
0x1b6b   :  { %2565 = vsyncpa [#allocation4], 1 }
0x1b6c   :  { %2566 = vsyncpa [#allocation7], 1 }
0x1b6d   :  { %2567 = vsyncpa [#allocation10], 1 }
0x1b6e   :  { %2568 = vsyncpa [#allocation13], 1 }
0x1b6f   :  { %2569 = vsyncpa [#allocation16], 1 }
0x1b70   :  { %2570 = vsyncpa [#allocation5], 1 }

</bundles_post_ra>
